<compile_context>
chip_gen: v5e
topology: v5e:2x2
jax: 0.10.0
libtpu: 0.0.40
codegen_flags: <defaults>
</compile_context>

<pallas_src>
import functools
import math

import jax
import jax.numpy as jnp
from jax.experimental import pallas as pl
from jax.experimental.pallas import tpu as pltpu


# ---------------------------------------------------------------------------
# helpers
# ---------------------------------------------------------------------------

def _pick_tile(n, target, align):
    """Largest divisor of n that is <= target and a multiple of `align` (else n)."""
    if n <= align:
        return n
    target = min(target, n)
    target -= target % align
    for t in range(target, align - 1, -align):
        if n % t == 0:
            return t
    return n


# contract the last dim of a with the last dim of b (nn.Linear weights are (out, in))
_NT_DIMS = (((1,), (1,)), ((), ()))


def _rope_rotate(x, cos_rep, sin_signed):
    """out[..., 2i]   = x[..., 2i] * cos_i - x[..., 2i+1] * sin_i
       out[..., 2i+1] = x[..., 2i] * sin_i + x[..., 2i+1] * cos_i

    cos_rep repeats each cos_i twice; sin_signed is [-sin_i, +sin_i, ...].
    The adjacent-pair swap is two lane rolls + a parity select (XLU/VPU only);
    pairs never straddle a 128-lane (head) boundary."""
    d = x.shape[-1]
    axis = x.ndim - 1
    lane = jax.lax.broadcasted_iota(jnp.int32, x.shape, axis)
    swapped = jnp.where(lane % 2 == 0,
                        pltpu.roll(x, d - 1, axis),   # picks x[..., j + 1]
                        pltpu.roll(x, 1, axis))       # picks x[..., j - 1]
    return x * cos_rep + swapped * sin_signed


# ---------------------------------------------------------------------------
# kernels
# ---------------------------------------------------------------------------

def _qkv_rope_kernel(*refs, n_x, compute_dtype):
    """Fused Q/K/V projection with bias + RoPE epilogue (RoPE on q/k only).

    n_x == 1: self-attention, a single activation ref shared by all three GEMMs.
    The 1/sqrt(D) attention scale is pre-folded into the q cos/sin tables.
    """
    if n_x == 1:
        xq_ref = xk_ref = xv_ref = refs[0]
    else:
        xq_ref, xk_ref, xv_ref = refs[:3]
    (wq_ref, wk_ref, wv_ref, bq_ref, bk_ref, bv_ref,
     cosq_ref, sinq_ref, cosk_ref, sink_ref,
     q_out, k_out, v_out, acc_q, acc_k, acc_v) = refs[n_x:]

    kk = pl.program_id(2)

    @pl.when(kk == 0)
    def _():
        acc_q[...] = jnp.zeros_like(acc_q)
        acc_k[...] = jnp.zeros_like(acc_k)
        acc_v[...] = jnp.zeros_like(acc_v)

    def cast(t):
        return t if compute_dtype is None else t.astype(compute_dtype)

    xq = cast(xq_ref[...])
    if n_x == 1:
        xk = xv = xq
    else:
        xk = cast(xk_ref[...])
        xv = cast(xv_ref[...])

    acc_q[...] += jax.lax.dot_general(xq, cast(wq_ref[...]), _NT_DIMS,
                                      preferred_element_type=jnp.float32)
    acc_k[...] += jax.lax.dot_general(xk, cast(wk_ref[...]), _NT_DIMS,
                                      preferred_element_type=jnp.float32)
    acc_v[...] += jax.lax.dot_general(xv, cast(wv_ref[...]), _NT_DIMS,
                                      preferred_element_type=jnp.float32)

    @pl.when(kk == pl.num_programs(2) - 1)
    def _():
        q = acc_q[...] + bq_ref[...]
        k = acc_k[...] + bk_ref[...]
        v = acc_v[...] + bv_ref[...]
        q_out[...] = _rope_rotate(q, cosq_ref[...], sinq_ref[...]).astype(q_out.dtype)
        k_out[...] = _rope_rotate(k, cosk_ref[...], sink_ref[...]).astype(k_out.dtype)
        v_out[...] = v.astype(v_out.dtype)


def _linear_kernel(x_ref, w_ref, b_ref, o_ref, acc_ref, *, compute_dtype):
    """y = x @ W.T + b (output projection), tiled M/N/K with an f32 accumulator."""
    kk = pl.program_id(2)

    @pl.when(kk == 0)
    def _():
        acc_ref[...] = jnp.zeros_like(acc_ref)

    x = x_ref[...]
    w = w_ref[...]
    if compute_dtype is not None:
        x = x.astype(compute_dtype)
        w = w.astype(compute_dtype)
    acc_ref[...] += jax.lax.dot_general(x, w, _NT_DIMS,
                                        preferred_element_type=jnp.float32)

    @pl.when(kk == pl.num_programs(2) - 1)
    def _():
        o_ref[...] = (acc_ref[...] + b_ref[...]).astype(o_ref.dtype)


def _flash_attention_kernel(q_ref, k_ref, v_ref, o_ref, m_sc, l_sc, acc_sc, *,
                            compute_dtype):
    """Online-softmax attention; grid = (batch, heads, q tiles, kv tiles).

    Q is pre-scaled by 1/sqrt(D) (folded into its RoPE tables), so no per-step
    score scaling is needed here.
    """
    ki = pl.program_id(3)

    @pl.when(ki == 0)
    def _():
        m_sc[...] = jnp.full_like(m_sc, -jnp.inf)
        l_sc[...] = jnp.zeros_like(l_sc)
        acc_sc[...] = jnp.zeros_like(acc_sc)

    q = q_ref[...]                    # (tq, D)
    k = k_ref[...]                    # (tkv, D)
    v = v_ref[...]                    # (tkv, D)
    if compute_dtype is not None:
        q = q.astype(compute_dtype)
        k = k.astype(compute_dtype)
        v = v.astype(compute_dtype)

    s = jax.lax.dot_general(q, k, _NT_DIMS,
                            preferred_element_type=jnp.float32)    # (tq, tkv)
    # TODO(synk): causal-mask path (module's mask=True) not implemented; only the
    # module's default forward call (mask=None) is reproduced here.

    m_prev = m_sc[...]
    m_new = jnp.maximum(m_prev, s.max(axis=-1, keepdims=True))
    alpha = jnp.exp(m_prev - m_new)
    p = jnp.exp(s - m_new)
    l_sc[...] = alpha * l_sc[...] + p.sum(axis=-1, keepdims=True)
    acc_sc[...] = alpha * acc_sc[...] + jnp.dot(p.astype(v.dtype), v,
                                                preferred_element_type=jnp.float32)
    m_sc[...] = m_new

    @pl.when(ki == pl.num_programs(3) - 1)
    def _():
        # TODO(synk): nn.Dropout on the attention probabilities is an eval-mode no-op
        # and is not implemented.
        inv_l = pl.reciprocal(l_sc[...], approx=True)
        o_ref[...] = (acc_sc[...] * inv_l).astype(o_ref.dtype)


# ---------------------------------------------------------------------------
# wrapper
# ---------------------------------------------------------------------------

def multi_head_attention(xq, xk, xv, wq, bq, wk, bk, wv, bv, wo, bo, *, n_heads,
                         rope_base=10000.0, mxu_dtype=None,
                         tm_target=None, tn_target=None, tk_target=None,
                         tq_target=None, tkv_target=None,
                         vmem_limit_bytes=None):
    """Forward pass of the reference MultiHeadAttention module.

    xq/xk/xv: (B, S, d_model).  Weights are nn.Linear layout (out, in); biases (d_model,).
    mxu_dtype: optional matmul operand dtype (e.g. jnp.bfloat16); accumulation is f32.
    """
    B, S, d_model = xq.shape
    assert xk.shape == xq.shape and xv.shape == xq.shape
    assert d_model % n_heads == 0
    D = d_model // n_heads
    assert D % 2 == 0
    # TODO(synk): for head_dim < 128, pack multiple heads per attention lane block.
    assert D % 128 == 0, "attention kernel assumes head_dim is a multiple of 128"
    M = B * S
    itemsize = jnp.dtype(xq.dtype).itemsize

    self_attention = (xk is xq) and (xv is xq)

    # ---- hardware-derived budgets (v5e/v6e: 128 MiB VMEM, v7x: 64 MiB/TC) ----------
    try:
        vmem_cap = int(pltpu.get_tpu_info().vmem_capacity_bytes)
    except Exception:
        vmem_cap = 64 * 1024 * 1024
    big_vmem = vmem_cap >= 96 * 1024 * 1024
    if vmem_limit_bytes is None:
        vmem_limit_bytes = min(int(vmem_cap * 3 // 4), 100 * 1024 * 1024)
    if tm_target is None:
        tm_target = 512 if big_vmem else 384
    if tn_target is None:
        tn_target = 512 if big_vmem else 256
    if tk_target is None:
        tk_target = 1024 if big_vmem else 512
    if tq_target is None:
        tq_target = 512 if big_vmem else 256
    if tkv_target is None:
        tkv_target = 512

    compute_itemsize = jnp.dtype(mxu_dtype).itemsize if mxu_dtype is not None else itemsize
    sub_align = 16 if compute_itemsize < 4 else 8

    # ---- tile sizes (divisors; lane dims 128-aligned, sublane dims 8/16-aligned) ----
    tm = _pick_tile(M, tm_target, sub_align)
    if M // tm < 2:  # keep the parallel M axis >= 2 grid steps (v7x: 2 TensorCores)
        alt = _pick_tile(M, max(sub_align, M // 2), sub_align)
        if M // alt >= 2:
            tm = alt
    tn = _pick_tile(d_model, tn_target, 128)
    tk = _pick_tile(d_model, tk_target, 128)
    tq = _pick_tile(S, tq_target, sub_align)
    tkv = _pick_tile(S, tkv_target, sub_align)

    # ---- RoPE tables: reproduces the module exactly (angles indexed by HEAD) --------
    scale = 1.0 / math.sqrt(D)
    inv_freq = 1.0 / (rope_base ** (jnp.arange(0, D, 2, dtype=jnp.float32) / D))
    ang = jnp.arange(n_heads, dtype=jnp.float32)[:, None] * inv_freq[None, :]  # (H, D/2)
    cos_flat = jnp.repeat(jnp.cos(ang), 2, axis=-1).reshape(1, d_model)
    sign = jnp.tile(jnp.array([-1.0, 1.0], dtype=jnp.float32), d_model // 2)
    sin_flat = jnp.repeat(jnp.sin(ang), 2, axis=-1).reshape(1, d_model) * sign
    cos_q = cos_flat * scale          # fold 1/sqrt(D) into q's rotation (and bias)
    sin_q = sin_flat * scale

    x2q = xq.reshape(M, d_model)
    x_args = (x2q,) if self_attention else (x2q, xk.reshape(M, d_model),
                                            xv.reshape(M, d_model))
    n_x = len(x_args)
    b2q = bq.reshape(1, d_model)
    b2k = bk.reshape(1, d_model)
    b2v = bv.reshape(1, d_model)
    b2o = bo.reshape(1, d_model)

    # ---- shared BlockSpecs for the projection GEMMs ----------------------------------
    x_spec = pl.BlockSpec((tm, tk), lambda i, j, kk: (i, kk))
    w_spec = pl.BlockSpec((tn, tk), lambda i, j, kk: (j, kk))   # (out, in) layout
    vec_spec = pl.BlockSpec((1, tn), lambda i, j, kk: (0, j))
    o_spec = pl.BlockSpec((tm, tn), lambda i, j, kk: (i, j))
    proj_grid = (M // tm, d_model // tn, d_model // tk)
    proj_sem = ("parallel", "parallel", "arbitrary")

    # ---- 1) fused QKV projection + RoPE ----------------------------------------------
    qkv_cost = pl.CostEstimate(
        flops=3 * 2 * M * d_model * d_model,
        transcendentals=0,
        bytes_accessed=(n_x * M * d_model * (d_model // tn)
                        + 3 * d_model * d_model * (M // tm)
                        + 3 * M * d_model) * itemsize)

    q_p, k_p, v_p = pl.pallas_call(
        functools.partial(_qkv_rope_kernel, n_x=n_x, compute_dtype=mxu_dtype),
        out_shape=(jax.ShapeDtypeStruct((M, d_model), xq.dtype),) * 3,
        grid_spec=pltpu.PrefetchScalarGridSpec(
            num_scalar_prefetch=0,
            grid=proj_grid,
            in_specs=[x_spec] * n_x + [w_spec] * 3 + [vec_spec] * 7,
            out_specs=(o_spec, o_spec, o_spec),
            scratch_shapes=[pltpu.VMEM((tm, tn), jnp.float32)] * 3),
        compiler_params=pltpu.CompilerParams(
            dimension_semantics=proj_sem, vmem_limit_bytes=vmem_limit_bytes),
        cost_estimate=qkv_cost,
    )(*x_args, wq, wk, wv, b2q, b2k, b2v, cos_q, sin_q, cos_flat, sin_flat)

    # ---- 2) flash attention over (batch, heads, q tiles, kv tiles) --------------------
    # Head blocks are addressed directly in the flat (M, d_model) layout: row block
    # b*(S//tq)+qi, column block h.  The context output is likewise written straight
    # into (M, d_model), so no head split/merge transposes are needed anywhere.
    gq = S // tq
    gkv = S // tkv

    attn_cost = pl.CostEstimate(
        flops=4 * B * n_heads * S * S * D,
        transcendentals=B * n_heads * S * S,
        bytes_accessed=M * d_model * (2 + 2 * gq) * itemsize)

    ctx = pl.pallas_call(
        functools.partial(_flash_attention_kernel, compute_dtype=mxu_dtype),
        out_shape=jax.ShapeDtypeStruct((M, d_model), xq.dtype),
        grid_spec=pltpu.PrefetchScalarGridSpec(
            num_scalar_prefetch=0,
            grid=(B, n_heads, gq, gkv),
            in_specs=[pl.BlockSpec((tq, D), lambda b, h, qi, ki: (b * gq + qi, h)),
                      pl.BlockSpec((tkv, D), lambda b, h, qi, ki: (b * gkv + ki, h)),
                      pl.BlockSpec((tkv, D), lambda b, h, qi, ki: (b * gkv + ki, h))],
            out_specs=pl.BlockSpec((tq, D), lambda b, h, qi, ki: (b * gq + qi, h)),
            scratch_shapes=[pltpu.VMEM((tq, 1), jnp.float32),
                            pltpu.VMEM((tq, 1), jnp.float32),
                            pltpu.VMEM((tq, D), jnp.float32)]),
        compiler_params=pltpu.CompilerParams(
            dimension_semantics=("parallel", "parallel", "parallel", "arbitrary"),
            vmem_limit_bytes=vmem_limit_bytes),
        cost_estimate=attn_cost,
    )(q_p, k_p, v_p)

    # ---- 3) output projection ---------------------------------------------------------
    out_cost = pl.CostEstimate(
        flops=2 * M * d_model * d_model,
        transcendentals=0,
        bytes_accessed=(M * d_model * (d_model // tn)
                        + d_model * d_model * (M // tm)
                        + M * d_model) * itemsize)

    out = pl.pallas_call(
        functools.partial(_linear_kernel, compute_dtype=mxu_dtype),
        out_shape=jax.ShapeDtypeStruct((M, d_model), xq.dtype),
        grid_spec=pltpu.PrefetchScalarGridSpec(
            num_scalar_prefetch=0,
            grid=proj_grid,
            in_specs=[x_spec, w_spec, vec_spec],
            out_specs=o_spec,
            scratch_shapes=[pltpu.VMEM((tm, tn), jnp.float32)]),
        compiler_params=pltpu.CompilerParams(
            dimension_semantics=proj_sem, vmem_limit_bytes=vmem_limit_bytes),
        cost_estimate=out_cost,
    )(ctx, wo, b2o)

    return out.reshape(B, S, d_model)


# ---------------------------------------------------------------------------
# pure-JAX reference (direct transcription of the PyTorch module)
# ---------------------------------------------------------------------------

def _mha_reference(xq, xk, xv, wq, bq, wk, bk, wv, bv, wo, bo, *, n_heads,
                   rope_base=10000.0):
    B, S, d_model = xq.shape
    D = d_model // n_heads

    def lin(x, w, b):
        return x @ w.T + b

    q = lin(xq, wq, bq).reshape(B, S, n_heads, D).transpose(0, 2, 1, 3)
    k = lin(xk, wk, bk).reshape(B, S, n_heads, D).transpose(0, 2, 1, 3)
    v = lin(xv, wv, bv).reshape(B, S, n_heads, D).transpose(0, 2, 1, 3)

    # RoPE.forward reads seq_len from q.size(1) == n_heads (module quirk preserved).
    inv_freq = 1.0 / (rope_base ** (jnp.arange(0, D, 2, dtype=jnp.float32) / D))
    ang = jnp.arange(n_heads, dtype=jnp.float32)[:, None] * inv_freq[None, :]
    cos = jnp.cos(ang)[None, :, None, :]
    sin = jnp.sin(ang)[None, :, None, :]

    def rot(x):
        x1 = x[..., 0::2]
        x2 = x[..., 1::2]
        r1 = x1 * cos - x2 * sin
        r2 = x1 * sin + x2 * cos
        return jnp.stack([r1, r2], axis=-1).reshape(x.shape)

    q, k = rot(q), rot(k)
    s = jnp.einsum("bhqd,bhkd->bhqk", q, k) / jnp.sqrt(jnp.float32(D))
    p = jax.nn.softmax(s, axis=-1)
    o = jnp.einsum("bhqk,bhkd->bhqd", p, v)
    o = o.transpose(0, 2, 1, 3).reshape(B, S, d_model)
    return lin(o, wo, bo)


# ---------------------------------------------------------------------------
# test
# ---------------------------------------------------------------------------

if __name__ == "__main__":
    batch, seq = 2, 16
    n_heads_t, d_model = 4, 512       # head_dim = 128, matching the module's global

    key = jax.random.PRNGKey(0)
    ks = jax.random.split(key, 9)
    x = jax.random.normal(ks[0], (batch, seq, d_model), dtype=jnp.float32)
    wq = jax.random.normal(ks[1], (d_model, d_model), dtype=jnp.float32) * 0.03
    wk = jax.random.normal(ks[2], (d_model, d_model), dtype=jnp.float32) * 0.03
    wv = jax.random.normal(ks[3], (d_model, d_model), dtype=jnp.float32) * 0.03
    wo = jax.random.normal(ks[4], (d_model, d_model), dtype=jnp.float32) * 0.03
    bq = jax.random.normal(ks[5], (d_model,), dtype=jnp.float32) * 0.02
    bk = jax.random.normal(ks[6], (d_model,), dtype=jnp.float32) * 0.02
    bv = jax.random.normal(ks[7], (d_model,), dtype=jnp.float32) * 0.02
    bo = jax.random.normal(ks[8], (d_model,), dtype=jnp.float32) * 0.02

    ref = _mha_reference(x, x, x, wq, bq, wk, bk, wv, bv, wo, bo, n_heads=n_heads_t)

    # f32 path (strict check)
    out = multi_head_attention(x, x, x, wq, bq, wk, bk, wv, bv, wo, bo,
                               n_heads=n_heads_t)
    out = jax.block_until_ready(out)
    assert out.shape == (batch, seq, d_model)
    max_err = float(jnp.max(jnp.abs(out - ref)))
    assert jnp.allclose(out, ref, atol=2e-2, rtol=2e-2), f"f32 max abs err {max_err}"

    # bf16 MXU path with f32 accumulation (perf feedback) — loose check vs f32 ref
    out_bf16 = multi_head_attention(x, x, x, wq, bq, wk, bk, wv, bv, wo, bo,
                                    n_heads=n_heads_t, mxu_dtype=jnp.bfloat16)
    out_bf16 = jax.block_until_ready(out_bf16)
    max_err_b = float(jnp.max(jnp.abs(out_bf16 - ref)))
    assert jnp.allclose(out_bf16, ref, atol=1e-1, rtol=1e-1), \
        f"bf16 max abs err {max_err_b}"

    print("KERNEL_OK")
</pallas_src>

<mosaic_0001>
module attributes {stable_mosaic.version = 11 : i64} {
  func.func @_qkv_rope_kernel(%arg0: i32, %arg1: i32, %arg2: i32, %arg3: memref<16x512xf32, #tpu.memory_space<vmem>>, %arg4: memref<256x512xf32, #tpu.memory_space<vmem>>, %arg5: memref<256x512xf32, #tpu.memory_space<vmem>>, %arg6: memref<256x512xf32, #tpu.memory_space<vmem>>, %arg7: memref<1x256xf32, #tpu.memory_space<vmem>>, %arg8: memref<1x256xf32, #tpu.memory_space<vmem>>, %arg9: memref<1x256xf32, #tpu.memory_space<vmem>>, %arg10: memref<1x256xf32, #tpu.memory_space<vmem>>, %arg11: memref<1x256xf32, #tpu.memory_space<vmem>>, %arg12: memref<1x256xf32, #tpu.memory_space<vmem>>, %arg13: memref<1x256xf32, #tpu.memory_space<vmem>>, %arg14: memref<16x256xf32, #tpu.memory_space<vmem>>, %arg15: memref<16x256xf32, #tpu.memory_space<vmem>>, %arg16: memref<16x256xf32, #tpu.memory_space<vmem>>, %arg17: memref<16x256xf32, #tpu.memory_space<vmem>>, %arg18: memref<16x256xf32, #tpu.memory_space<vmem>>, %arg19: memref<16x256xf32, #tpu.memory_space<vmem>>) attributes {dimension_semantics = [#tpu.dimension_semantics<parallel>, #tpu.dimension_semantics<parallel>, #tpu.dimension_semantics<arbitrary>], iteration_bounds = array<i64: 2, 2, 1>, scalar_prefetch = 0 : i64, scratch_operands = 3 : i64, tpu.core_type = #tpu.core_type<tc>, window_params = [{transform_indices = @transform_0, window_bounds = array<i64: 16, 512>}, {transform_indices = @transform_1, window_bounds = array<i64: 256, 512>}, {transform_indices = @transform_2, window_bounds = array<i64: 256, 512>}, {transform_indices = @transform_3, window_bounds = array<i64: 256, 512>}, {transform_indices = @transform_4, window_bounds = array<i64: 1, 256>}, {transform_indices = @transform_5, window_bounds = array<i64: 1, 256>}, {transform_indices = @transform_6, window_bounds = array<i64: 1, 256>}, {transform_indices = @transform_7, window_bounds = array<i64: 1, 256>}, {transform_indices = @transform_8, window_bounds = array<i64: 1, 256>}, {transform_indices = @transform_9, window_bounds = array<i64: 1, 256>}, {transform_indices = @transform_10, window_bounds = array<i64: 1, 256>}, {transform_indices = @transform_11, window_bounds = array<i64: 16, 256>}, {transform_indices = @transform_12, window_bounds = array<i64: 16, 256>}, {transform_indices = @transform_13, window_bounds = array<i64: 16, 256>}]} {
    %c0_i32 = arith.constant 0 : i32
    %0 = arith.cmpi eq, %arg2, %c0_i32 : i32
    %1 = arith.extui %0 : i1 to i32
    %c0_i32_0 = arith.constant 0 : i32
    %2 = arith.cmpi ne, %1, %c0_i32_0 : i32
    scf.if %2 {
      %cst_24 = arith.constant 0.000000e+00 : f32
      %22 = vector.broadcast %cst_24 : f32 to vector<16x256xf32>
      %c0_25 = arith.constant 0 : index
      %c0_26 = arith.constant 0 : index
      %23 = vector.load %arg17[%c0_25, %c0_26] : memref<16x256xf32, #tpu.memory_space<vmem>>, vector<16x256xf32>
      tpu.vector_store %arg17[%c0_25, %c0_26], %22 {strides = array<i32>} : memref<16x256xf32, #tpu.memory_space<vmem>>, vector<16x256xf32>,
      %cst_27 = arith.constant 0.000000e+00 : f32
      %24 = vector.broadcast %cst_27 : f32 to vector<16x256xf32>
      %c0_28 = arith.constant 0 : index
      %c0_29 = arith.constant 0 : index
      %25 = vector.load %arg18[%c0_28, %c0_29] : memref<16x256xf32, #tpu.memory_space<vmem>>, vector<16x256xf32>
      tpu.vector_store %arg18[%c0_28, %c0_29], %24 {strides = array<i32>} : memref<16x256xf32, #tpu.memory_space<vmem>>, vector<16x256xf32>,
      %cst_30 = arith.constant 0.000000e+00 : f32
      %26 = vector.broadcast %cst_30 : f32 to vector<16x256xf32>
      %c0_31 = arith.constant 0 : index
      %c0_32 = arith.constant 0 : index
      %27 = vector.load %arg19[%c0_31, %c0_32] : memref<16x256xf32, #tpu.memory_space<vmem>>, vector<16x256xf32>
      tpu.vector_store %arg19[%c0_31, %c0_32], %26 {strides = array<i32>} : memref<16x256xf32, #tpu.memory_space<vmem>>, vector<16x256xf32>,
    } else {
    }
    %c0 = arith.constant 0 : index
    %c0_1 = arith.constant 0 : index
    %3 = vector.load %arg3[%c0, %c0_1] : memref<16x512xf32, #tpu.memory_space<vmem>>, vector<16x512xf32>
    %c0_2 = arith.constant 0 : index
    %c0_3 = arith.constant 0 : index
    %4 = vector.load %arg17[%c0_2, %c0_3] : memref<16x256xf32, #tpu.memory_space<vmem>>, vector<16x256xf32>
    %c0_4 = arith.constant 0 : index
    %c0_5 = arith.constant 0 : index
    %5 = vector.load %arg4[%c0_4, %c0_5] : memref<256x512xf32, #tpu.memory_space<vmem>>, vector<256x512xf32>
    %cst = arith.constant dense<0.000000e+00> : vector<16x256xf32>
    %6 = tpu.matmul %3, %5, %cst {dimension_numbers = #tpu.dot_dimension_numbers<[1], [1], [0], [0], [0, 0, 1, 0], [], []>} : vector<16x512xf32>, vector<256x512xf32>, vector<16x256xf32> -> vector<16x256xf32>
    %7 = arith.addf %4, %6 : vector<16x256xf32>
    %c0_6 = arith.constant 0 : index
    %c0_7 = arith.constant 0 : index
    %8 = vector.load %arg17[%c0_6, %c0_7] : memref<16x256xf32, #tpu.memory_space<vmem>>, vector<16x256xf32>
    tpu.vector_store %arg17[%c0_6, %c0_7], %7 {strides = array<i32>} : memref<16x256xf32, #tpu.memory_space<vmem>>, vector<16x256xf32>,
    %c0_8 = arith.constant 0 : index
    %c0_9 = arith.constant 0 : index
    %9 = vector.load %arg18[%c0_8, %c0_9] : memref<16x256xf32, #tpu.memory_space<vmem>>, vector<16x256xf32>
    %c0_10 = arith.constant 0 : index
    %c0_11 = arith.constant 0 : index
    %10 = vector.load %arg5[%c0_10, %c0_11] : memref<256x512xf32, #tpu.memory_space<vmem>>, vector<256x512xf32>
    %cst_12 = arith.constant dense<0.000000e+00> : vector<16x256xf32>
    %11 = tpu.matmul %3, %10, %cst_12 {dimension_numbers = #tpu.dot_dimension_numbers<[1], [1], [0], [0], [0, 0, 1, 0], [], []>} : vector<16x512xf32>, vector<256x512xf32>, vector<16x256xf32> -> vector<16x256xf32>
    %12 = arith.addf %9, %11 : vector<16x256xf32>
    %c0_13 = arith.constant 0 : index
    %c0_14 = arith.constant 0 : index
    %13 = vector.load %arg18[%c0_13, %c0_14] : memref<16x256xf32, #tpu.memory_space<vmem>>, vector<16x256xf32>
    tpu.vector_store %arg18[%c0_13, %c0_14], %12 {strides = array<i32>} : memref<16x256xf32, #tpu.memory_space<vmem>>, vector<16x256xf32>,
    %c0_15 = arith.constant 0 : index
    %c0_16 = arith.constant 0 : index
    %14 = vector.load %arg19[%c0_15, %c0_16] : memref<16x256xf32, #tpu.memory_space<vmem>>, vector<16x256xf32>
    %c0_17 = arith.constant 0 : index
    %c0_18 = arith.constant 0 : index
    %15 = vector.load %arg6[%c0_17, %c0_18] : memref<256x512xf32, #tpu.memory_space<vmem>>, vector<256x512xf32>
    %cst_19 = arith.constant dense<0.000000e+00> : vector<16x256xf32>
    %16 = tpu.matmul %3, %15, %cst_19 {dimension_numbers = #tpu.dot_dimension_numbers<[1], [1], [0], [0], [0, 0, 1, 0], [], []>} : vector<16x512xf32>, vector<256x512xf32>, vector<16x256xf32> -> vector<16x256xf32>
    %17 = arith.addf %14, %16 : vector<16x256xf32>
    %c0_20 = arith.constant 0 : index
    %c0_21 = arith.constant 0 : index
    %18 = vector.load %arg19[%c0_20, %c0_21] : memref<16x256xf32, #tpu.memory_space<vmem>>, vector<16x256xf32>
    tpu.vector_store %arg19[%c0_20, %c0_21], %17 {strides = array<i32>} : memref<16x256xf32, #tpu.memory_space<vmem>>, vector<16x256xf32>,
    %c0_i32_22 = arith.constant 0 : i32
    %19 = arith.cmpi eq, %arg2, %c0_i32_22 : i32
    %20 = arith.extui %19 : i1 to i32
    %c0_i32_23 = arith.constant 0 : i32
    %21 = arith.cmpi ne, %20, %c0_i32_23 : i32
    scf.if %21 {
      %c0_24 = arith.constant 0 : index
      %c0_25 = arith.constant 0 : index
      %22 = vector.load %arg17[%c0_24, %c0_25] : memref<16x256xf32, #tpu.memory_space<vmem>>, vector<16x256xf32>
      %c0_26 = arith.constant 0 : index
      %c0_27 = arith.constant 0 : index
      %23 = vector.load %arg7[%c0_26, %c0_27] : memref<1x256xf32, #tpu.memory_space<vmem>>, vector<1x256xf32>
      %24 = vector.broadcast %23 : vector<1x256xf32> to vector<16x256xf32>
      %25 = arith.addf %22, %24 : vector<16x256xf32>
      %c0_28 = arith.constant 0 : index
      %c0_29 = arith.constant 0 : index
      %26 = vector.load %arg18[%c0_28, %c0_29] : memref<16x256xf32, #tpu.memory_space<vmem>>, vector<16x256xf32>
      %c0_30 = arith.constant 0 : index
      %c0_31 = arith.constant 0 : index
      %27 = vector.load %arg8[%c0_30, %c0_31] : memref<1x256xf32, #tpu.memory_space<vmem>>, vector<1x256xf32>
      %28 = vector.broadcast %27 : vector<1x256xf32> to vector<16x256xf32>
      %29 = arith.addf %26, %28 : vector<16x256xf32>
      %c0_32 = arith.constant 0 : index
      %c0_33 = arith.constant 0 : index
      %30 = vector.load %arg19[%c0_32, %c0_33] : memref<16x256xf32, #tpu.memory_space<vmem>>, vector<16x256xf32>
      %c0_34 = arith.constant 0 : index
      %c0_35 = arith.constant 0 : index
      %31 = vector.load %arg9[%c0_34, %c0_35] : memref<1x256xf32, #tpu.memory_space<vmem>>, vector<1x256xf32>
      %32 = vector.broadcast %31 : vector<1x256xf32> to vector<16x256xf32>
      %33 = arith.addf %30, %32 : vector<16x256xf32>
      %c0_36 = arith.constant 0 : index
      %c0_37 = arith.constant 0 : index
      %34 = vector.load %arg10[%c0_36, %c0_37] : memref<1x256xf32, #tpu.memory_space<vmem>>, vector<1x256xf32>
      %c0_38 = arith.constant 0 : index
      %c0_39 = arith.constant 0 : index
      %35 = vector.load %arg11[%c0_38, %c0_39] : memref<1x256xf32, #tpu.memory_space<vmem>>, vector<1x256xf32>
      %36 = tpu.iota {dimensions = array<i32: 1>} : vector<16x256xi32>
      %c2_i32 = arith.constant 2 : i32
      %c0_i32_40 = arith.constant 0 : i32
      %37 = arith.cmpi eq, %c2_i32, %c0_i32_40 : i32
      %c1_i32 = arith.constant 1 : i32
      %38 = arith.select %37, %c1_i32, %c2_i32 : i32
      %39 = vector.broadcast %38 : i32 to vector<16x256xi32>
      %40 = arith.remsi %36, %39 : vector<16x256xi32>
      %c0_i32_41 = arith.constant 0 : i32
      %41 = vector.broadcast %c0_i32_41 : i32 to vector<16x256xi32>
      %42 = arith.cmpi ne, %40, %41 : vector<16x256xi32>
      %c0_i32_42 = arith.constant 0 : i32
      %43 = vector.broadcast %c0_i32_42 : i32 to vector<16x256xi32>
      %44 = arith.cmpi slt, %40, %43 : vector<16x256xi32>
      %c0_i32_43 = arith.constant 0 : i32
      %45 = arith.cmpi slt, %38, %c0_i32_43 : i32
      %46 = vector.broadcast %45 : i1 to vector<16x256xi1>
      %47 = vector.broadcast %46 : vector<16x256xi1> to vector<16x256xi1>
      %48 = arith.xori %44, %47 : vector<16x256xi1>
      %49 = arith.andi %48, %42 : vector<16x256xi1>
      %50 = vector.broadcast %38 : i32 to vector<16x256xi32>
      %51 = arith.addi %40, %50 : vector<16x256xi32>
      %52 = arith.select %49, %51, %40 : vector<16x256xi1>, vector<16x256xi32>
      %c0_i32_44 = arith.constant 0 : i32
      %53 = vector.broadcast %c0_i32_44 : i32 to vector<16x256xi32>
      %54 = arith.cmpi eq, %52, %53 : vector<16x256xi32>
      %c255_i32 = arith.constant 255 : i32
      %55 = tpu.dynamic_rotate %25 by %c255_i32 dim 1 : vector<16x256xf32>, i32 -> vector<16x256xf32>
      %c1_i32_45 = arith.constant 1 : i32
      %56 = tpu.dynamic_rotate %25 by %c1_i32_45 dim 1 : vector<16x256xf32>, i32 -> vector<16x256xf32>
      %57 = arith.select %54, %55, %56 : vector<16x256xi1>, vector<16x256xf32>
      %58 = vector.broadcast %34 : vector<1x256xf32> to vector<16x256xf32>
      %59 = arith.mulf %25, %58 : vector<16x256xf32>
      %60 = vector.broadcast %35 : vector<1x256xf32> to vector<16x256xf32>
      %61 = arith.mulf %57, %60 : vector<16x256xf32>
      %62 = arith.addf %59, %61 : vector<16x256xf32>
      %c0_46 = arith.constant 0 : index
      %c0_47 = arith.constant 0 : index
      %63 = vector.load %arg14[%c0_46, %c0_47] : memref<16x256xf32, #tpu.memory_space<vmem>>, vector<16x256xf32>
      tpu.vector_store %arg14[%c0_46, %c0_47], %62 {strides = array<i32>} : memref<16x256xf32, #tpu.memory_space<vmem>>, vector<16x256xf32>,
      %c0_48 = arith.constant 0 : index
      %c0_49 = arith.constant 0 : index
      %64 = vector.load %arg12[%c0_48, %c0_49] : memref<1x256xf32, #tpu.memory_space<vmem>>, vector<1x256xf32>
      %c0_50 = arith.constant 0 : index
      %c0_51 = arith.constant 0 : index
      %65 = vector.load %arg13[%c0_50, %c0_51] : memref<1x256xf32, #tpu.memory_space<vmem>>, vector<1x256xf32>
      %66 = tpu.iota {dimensions = array<i32: 1>} : vector<16x256xi32>
      %c2_i32_52 = arith.constant 2 : i32
      %c0_i32_53 = arith.constant 0 : i32
      %67 = arith.cmpi eq, %c2_i32_52, %c0_i32_53 : i32
      %c1_i32_54 = arith.constant 1 : i32
      %68 = arith.select %67, %c1_i32_54, %c2_i32_52 : i32
      %69 = vector.broadcast %68 : i32 to vector<16x256xi32>
      %70 = arith.remsi %66, %69 : vector<16x256xi32>
      %c0_i32_55 = arith.constant 0 : i32
      %71 = vector.broadcast %c0_i32_55 : i32 to vector<16x256xi32>
      %72 = arith.cmpi ne, %70, %71 : vector<16x256xi32>
      %c0_i32_56 = arith.constant 0 : i32
      %73 = vector.broadcast %c0_i32_56 : i32 to vector<16x256xi32>
      %74 = arith.cmpi slt, %70, %73 : vector<16x256xi32>
      %c0_i32_57 = arith.constant 0 : i32
      %75 = arith.cmpi slt, %68, %c0_i32_57 : i32
      %76 = vector.broadcast %75 : i1 to vector<16x256xi1>
      %77 = vector.broadcast %76 : vector<16x256xi1> to vector<16x256xi1>
      %78 = arith.xori %74, %77 : vector<16x256xi1>
      %79 = arith.andi %78, %72 : vector<16x256xi1>
      %80 = vector.broadcast %68 : i32 to vector<16x256xi32>
      %81 = arith.addi %70, %80 : vector<16x256xi32>
      %82 = arith.select %79, %81, %70 : vector<16x256xi1>, vector<16x256xi32>
      %c0_i32_58 = arith.constant 0 : i32
      %83 = vector.broadcast %c0_i32_58 : i32 to vector<16x256xi32>
      %84 = arith.cmpi eq, %82, %83 : vector<16x256xi32>
      %c255_i32_59 = arith.constant 255 : i32
      %85 = tpu.dynamic_rotate %29 by %c255_i32_59 dim 1 : vector<16x256xf32>, i32 -> vector<16x256xf32>
      %c1_i32_60 = arith.constant 1 : i32
      %86 = tpu.dynamic_rotate %29 by %c1_i32_60 dim 1 : vector<16x256xf32>, i32 -> vector<16x256xf32>
      %87 = arith.select %84, %85, %86 : vector<16x256xi1>, vector<16x256xf32>
      %88 = vector.broadcast %64 : vector<1x256xf32> to vector<16x256xf32>
      %89 = arith.mulf %29, %88 : vector<16x256xf32>
      %90 = vector.broadcast %65 : vector<1x256xf32> to vector<16x256xf32>
      %91 = arith.mulf %87, %90 : vector<16x256xf32>
      %92 = arith.addf %89, %91 : vector<16x256xf32>
      %c0_61 = arith.constant 0 : index
      %c0_62 = arith.constant 0 : index
      %93 = vector.load %arg15[%c0_61, %c0_62] : memref<16x256xf32, #tpu.memory_space<vmem>>, vector<16x256xf32>
      tpu.vector_store %arg15[%c0_61, %c0_62], %92 {strides = array<i32>} : memref<16x256xf32, #tpu.memory_space<vmem>>, vector<16x256xf32>,
      %c0_63 = arith.constant 0 : index
      %c0_64 = arith.constant 0 : index
      %94 = vector.load %arg16[%c0_63, %c0_64] : memref<16x256xf32, #tpu.memory_space<vmem>>, vector<16x256xf32>
      tpu.vector_store %arg16[%c0_63, %c0_64], %33 {strides = array<i32>} : memref<16x256xf32, #tpu.memory_space<vmem>>, vector<16x256xf32>,
    } else {
    }
    return
  }
  func.func @transform_0(%arg0: i32, %arg1: i32, %arg2: i32) -> (i32, i32) {
    %c0_i32 = arith.constant 0 : i32
    return %arg0, %arg2 : i32, i32
  }
  func.func @transform_1(%arg0: i32, %arg1: i32, %arg2: i32) -> (i32, i32) {
    %c0_i32 = arith.constant 0 : i32
    return %arg1, %arg2 : i32, i32
  }
  func.func @transform_2(%arg0: i32, %arg1: i32, %arg2: i32) -> (i32, i32) {
    %c0_i32 = arith.constant 0 : i32
    return %arg1, %arg2 : i32, i32
  }
  func.func @transform_3(%arg0: i32, %arg1: i32, %arg2: i32) -> (i32, i32) {
    %c0_i32 = arith.constant 0 : i32
    return %arg1, %arg2 : i32, i32
  }
  func.func @transform_4(%arg0: i32, %arg1: i32, %arg2: i32) -> (i32, i32) {
    %c0_i32 = arith.constant 0 : i32
    %c0_i32_0 = arith.constant 0 : i32
    return %c0_i32, %arg1 : i32, i32
  }
  func.func @transform_5(%arg0: i32, %arg1: i32, %arg2: i32) -> (i32, i32) {
    %c0_i32 = arith.constant 0 : i32
    %c0_i32_0 = arith.constant 0 : i32
    return %c0_i32, %arg1 : i32, i32
  }
  func.func @transform_6(%arg0: i32, %arg1: i32, %arg2: i32) -> (i32, i32) {
    %c0_i32 = arith.constant 0 : i32
    %c0_i32_0 = arith.constant 0 : i32
    return %c0_i32, %arg1 : i32, i32
  }
  func.func @transform_7(%arg0: i32, %arg1: i32, %arg2: i32) -> (i32, i32) {
    %c0_i32 = arith.constant 0 : i32
    %c0_i32_0 = arith.constant 0 : i32
    return %c0_i32, %arg1 : i32, i32
  }
  func.func @transform_8(%arg0: i32, %arg1: i32, %arg2: i32) -> (i32, i32) {
    %c0_i32 = arith.constant 0 : i32
    %c0_i32_0 = arith.constant 0 : i32
    return %c0_i32, %arg1 : i32, i32
  }
  func.func @transform_9(%arg0: i32, %arg1: i32, %arg2: i32) -> (i32, i32) {
    %c0_i32 = arith.constant 0 : i32
    %c0_i32_0 = arith.constant 0 : i32
    return %c0_i32, %arg1 : i32, i32
  }
  func.func @transform_10(%arg0: i32, %arg1: i32, %arg2: i32) -> (i32, i32) {
    %c0_i32 = arith.constant 0 : i32
    %c0_i32_0 = arith.constant 0 : i32
    return %c0_i32, %arg1 : i32, i32
  }
  func.func @transform_11(%arg0: i32, %arg1: i32, %arg2: i32) -> (i32, i32) {
    %c0_i32 = arith.constant 0 : i32
    return %arg0, %arg1 : i32, i32
  }
  func.func @transform_12(%arg0: i32, %arg1: i32, %arg2: i32) -> (i32, i32) {
    %c0_i32 = arith.constant 0 : i32
    return %arg0, %arg1 : i32, i32
  }
  func.func @transform_13(%arg0: i32, %arg1: i32, %arg2: i32) -> (i32, i32) {
    %c0_i32 = arith.constant 0 : i32
    return %arg0, %arg1 : i32, i32
  }
}

</mosaic_0001>

<bundles_post_ra>
// kernel: tpu_custom_call.1
= control target key start
LH: loop header
LB: loop body
LE: loop exit
PB: predicated region body
PF: predicated region fallthrough
CT: control target
= control target key end

     0   :  { %s4505_s0 = inlined_call_operand.hbm [shape: f32[32,512], index: 0, kind: input, shape index: {}]   ;;  %s4506_s1 = inlined_call_operand.hbm [shape: f32[512,512], index: 1, kind: input, shape index: {}]   ;;  %s4507_s2 = inlined_call_operand.hbm [shape: f32[512,512], index: 2, kind: input, shape index: {}]   ;;  %s4508_s3 = inlined_call_operand.hbm [shape: f32[512,512], index: 3, kind: input, shape index: {}]   ;;  %s4509_s4 = inlined_call_operand.hbm [shape: f32[1,512], index: 4, kind: input, shape index: {}]   ;;  %s4510_s5 = inlined_call_operand.vmem [shape: f32[1,512], index: 5, kind: input, shape index: {}]   ;;  %s4511_s6 = inlined_call_operand.hbm [shape: f32[1,512], index: 6, kind: input, shape index: {}]   ;;  %s4512_s7 = inlined_call_operand.hbm [shape: f32[1,512], index: 7, kind: input, shape index: {}]   ;;  %s4513_s8 = inlined_call_operand.hbm [shape: f32[1,512], index: 8, kind: input, shape index: {}]   ;;  %s4514_s9 = inlined_call_operand.vmem [shape: f32[1,512], index: 9, kind: input, shape index: {}]   ;;  %s4515_s10 = inlined_call_operand.hbm [shape: f32[1,512], index: 10, kind: input, shape index: {}]   ;;  %s4516_s11 = inlined_call_operand.hbm [shape: f32[32,512], index: 11, kind: output, shape index: {0}]   ;;  %s4517_s12 = inlined_call_operand.hbm [shape: f32[32,512], index: 12, kind: output, shape index: {1}]   ;;  %s4518_s13 = inlined_call_operand.hbm [shape: f32[32,512], index: 13, kind: output, shape index: {2}]  }
   0x1   :  { %4540 = sst [smem:[#allocation45_spill]] %s4505_s0 }
   0x2   :  { %4541 = sst [smem:[#allocation46_spill]] %s4506_s1 }
   0x3   :  { %4542 = sst [smem:[#allocation47_spill]] %s4507_s2 }
   0x4   :  { %4543 = sst [smem:[#allocation48_spill]] %s4508_s3 }
   0x5   :  { %4544 = sst [smem:[#allocation49_spill]] %s4509_s4 }
   0x6   :  { %4545 = sst [smem:[#allocation50_spill]] %s4510_s5 }
   0x7   :  { %4546 = sst [smem:[#allocation51_spill]] %s4511_s6 }
   0x8   :  { %4547 = sst [smem:[#allocation52_spill]] %s4512_s7 }
   0x9   :  { %4548 = sst [smem:[#allocation53_spill]] %s4513_s8 }
   0xa   :  { %4549 = sst [smem:[#allocation54_spill]] %s4514_s9 }
   0xb   :  { %4550 = sst [smem:[#allocation55_spill]] %s4515_s10 }
   0xc   :  { %4551 = sst [smem:[#allocation56_spill]] %s4516_s11 }
   0xd   :  { %4552 = sst [smem:[#allocation57_spill]] %s4517_s12 }
   0xe   :  { %4553 = sst [smem:[#allocation58_spill]] %s4518_s13 }
   0xf   :  { %19 = vsyncpa [#allocation6], 0 }
  0x10   :  { %21 = vsyncpa [#allocation6 + $0x1], 0 }
  0x11   :  { %22 = vsyncpa [#allocation9], 0 }
  0x12   :  { %24 = vsyncpa [#allocation9 + $0x1], 0 }
  0x13   :  { %25 = vsyncpa [#allocation12], 0 }
  0x14   :  { %27 = vsyncpa [#allocation12 + $0x1], 0 }
  0x15   :  { %28 = vsyncpa [#allocation15], 0 }
  0x16   :  { %30 = vsyncpa [#allocation15 + $0x1], 0 }
  0x17   :  { %31 = vsyncpa [#allocation18], 0 }
  0x18   :  { %33 = vsyncpa [#allocation18 + $0x1], 0 }
  0x19   :  { %34 = vsyncpa [#allocation7], 0 }
  0x1a   :  { %36 = vsyncpa [#allocation7 + $0x1], 0 }
  0x1b   :  { %37 = vsyncpa [#allocation22], 0 }
  0x1c   :  { %39 = vsyncpa [#allocation22 + $0x1], 0  ;;  %s3343_s25 = smov 0   ;;  %s3345_s26 = smov 0  }
  0x1d   :  { %s3347_s27 = smov 0   ;;  %s3349_s28 = smov 0  }
  0x1e   :  { %s3351_s29 = smov 0   ;;  %s3353_s30 = smov 0  }
  0x1f   :  { %s3355_s14 = smov 0   ;;  %s3357_s15 = smov 0  }
  0x20   :  { %s3359_s16 = smov 0   ;;  %s3361_s17 = smov 0  }
  0x21   :  { %s3363_s18 = smov 0   ;;  %s3365_s19 = smov 0  }
  0x22   :  { %s3367_s20 = smov 0   ;;  %s3369_s21 = smov 0  }
  0x23 LB: > { %4554 = sst [smem:[#allocation31_spill]] %s3212_s25  ;;  %s60_s22 = sadd.s32 1, %s3256_s19  ;;  %s3264_s21 = sphi %s3369_s21, %s45_s21   ;;  %s3260_s20 = sphi %s3367_s20, %s4624_s20   ;;  %s3256_s19 = sphi %s3365_s19, %s4623_s19   ;;  %s3252_s18 = sphi %s3363_s18, %s4622_s18   ;;  %s3248_s17 = sphi %s3361_s17, %s4621_s17   ;;  %s3244_s16 = sphi %s3359_s16, %s4620_s16   ;;  %s3240_s15 = sphi %s3357_s15, %s4628_s15   ;;  %s3236_s14 = sphi %s3355_s14, %s4627_s14   ;;  %s3232_s30 = sphi %s3353_s30, %s4618_s30   ;;  %s3228_s29 = sphi %s3351_s29, %s4626_s29   ;;  %s3224_s28 = sphi %s3349_s28, %s4625_s28   ;;  %s3220_s27 = sphi %s3347_s27, %s4616_s27   ;;  %s3216_s26 = sphi %s3345_s26, %s4615_s26   ;;  %s3212_s25 = sphi %s3343_s25, %s4614_s25  }
  0x24   : > { %4555 = sst [smem:[#allocation32_spill]] %s3216_s26  ;;  %p81_p0 = scmp.eq.s32.totalorder %s3264_s21, 0 }
  0x25   : > { %4556 = sst [smem:[#allocation33_spill]] %s3220_s27  ;;  %p3415_p1 = scmp.ge.s32.totalorder %s60_s22, 2 }
  0x26   : > { %4557 = sst [smem:[#allocation34_spill]] %s3232_s30  ;;  %p108_p2 = scmp.ne.s32.totalorder %s3232_s30, %s3228_s29 }
  0x27   : > { %4558 = sst [smem:[#allocation35_spill]] %s3244_s16  ;;  %p114_p3 = scmp.ne.s32.totalorder %s3228_s29, %s3224_s28 }
  0x28   : > { %4559 = sst [smem:[#allocation36_spill]] %s3248_s17  ;;  %s4630_s22 = smov (%p3415_p1, %s60_s22), 0 }
  0x29   : > { %4560 = sst [smem:[#allocation37_spill]] %s3252_s18  ;;  %p110_p4 = por %p108_p2, %p81_p0 }
  0x2a   : > { %4561 = sst [smem:[#allocation38_spill]] %s3256_s19  ;;  %p2643_p5 = scmp.lt.s32.totalorder %s3264_s21, 4 }
  0x2b   : > { %4562 = sst [smem:[#allocation39_spill]] %s3260_s20  ;;  %s3432_s11 = sand.u32 1, %s3264_s21  }
  0x2c   : > { %4564 = sst [smem:[#allocation40_spill]] %s4630_s22  ;;  %s4522_s13 = sand.u32 1, %s3232_s30  }
  0x2d   : > { %s3437_s12 = sshll.u32 %s4522_s13, 10  ;;  %s3440_s24 = sshll.u32 %s3256_s19, 10 }
  0x2e   : > { %s4565_s1 = sld [smem:[#allocation46_spill]]  ;;  %s489_s10 = scalar_lea.vmem [#allocation8], %s3437_s12 }
  0x2f   : > { %s500_s7 = sshll.u32 %s489_s10, 4  ;;  %p3449_p6 = pnand %p2643_p5, %p110_p4  ;;  %s501_s7 = int_to_ptr.vmem [resolvable:$true] %s500_s7 }
  0x30   : > { %p2538_p7 = scmp.ge.s32.totalorder %s3264_s21, 1  ;;  %p669_p8 = scmp.lt.s32.totalorder %s3264_s21, 5 }
  0x31   : > { %s4526_s9 = scalar_lea.sflag [#allocation9], %s3432_s11  ;;  %s4528_s18 = smov 512  }
  0x32   : > { %p3463_p9 = pnand %p2538_p7, %p669_p8  ;;  %s4568_s3 = sld [smem:[#allocation48_spill]] }
  0x33   : > { %s539_s25 = scalar_lea.vmem [#allocation11], %s3437_s12  ;;  %s4527_s27 = scalar_lea.sflag [#allocation12], %s3432_s11 }
  0x34   : > { %s497_s5 = scalar_lea.hbm %s4565_s1, %s3440_s24  ;;  %s550_s26 = sshll.u32 %s539_s25, 4  ;;  %s551_s26 = int_to_ptr.vmem [resolvable:$true] %s550_s26 }
  0x35   : > { %s498_s17 = sshll.u32 %s497_s5, 4  ;;  %s4530_s5 = smov 32   ;;  %s499_s17 = int_to_ptr.hbm [resolvable:$true] %s498_s17 }
  0x36   : > { %2611 = dma.hbm_to_vmem [thread:$0]  (!%p3449_p6), %s499_s17, 16384, %s501_s7, %s4526_s9, %s4528_s18, %s4528_s18, %s4530_s5  }
  0x37   : > { %s4569_s7 = sand.u32 1, %s3232_s30   ;;  %s3485_s1 = sshll.u32 %s3256_s19, 1 }
  0x38   : > { %s547_s2 = scalar_lea.hbm %s4568_s3, %s3440_s24  ;;  %s3482_s17 = sshll.u32 %s4569_s7, 1 }
  0x39   : > { %s548_s0 = sshll.u32 %s547_s2, 4  ;;  %s4570_s6 = sld [smem:[#allocation51_spill]]  ;;  %s549_s0 = int_to_ptr.hbm [resolvable:$true] %s548_s0 }
  0x3a   : > { %2617 = dma.hbm_to_vmem [thread:$0]  (!%p3449_p6), %s549_s0, 16384, %s551_s26, %s4527_s27, %s4528_s18, %s4528_s18, %s4530_s5  }
  0x3b   : > { %s591_s9 = scalar_lea.vmem [#allocation14], %s3482_s17  ;;  %s4533_s7 = scalar_lea.sflag [#allocation15], %s3432_s11 }
  0x3c   : > { %s599_s0 = sshll.u32 %s591_s9, 4  ;;  %s4571_s8 = sld [smem:[#allocation53_spill]]  ;;  %s600_s0 = int_to_ptr.vmem [resolvable:$true] %s599_s0 }
  0x3d   : > { %s4532_s5 = scalar_lea.sflag [#allocation18], %s3432_s11  ;;  %s64_s2 = sadd.s32 1, %s3260_s20 }
  0x3e   : > { %s4632_s2 = smov (!%p3415_p1, %s64_s2), %s3260_s20  ;;  %p80_p10 = scmp.ne.s32.totalorder %s3244_s16, %s3240_s15 }
  0x3f   : > { %s595_s25 = scalar_lea.hbm %s4570_s6, %s3485_s1  ;;  %s4572_s4 = sld [smem:[#allocation33_spill]] }
  0x40   : > { %s597_s26 = sshll.u32 %s595_s25, 4  ;;  %s629_s25 = scalar_lea.vmem [#allocation17], %s3482_s17  ;;  %s598_s26 = int_to_ptr.hbm [resolvable:$true] %s597_s26 }
  0x41   : > { %2623 = dma.hbm_to_vmem [thread:$0]  (!%p3449_p6), %s598_s26, 32, %s600_s0, %s4533_s7  }
  0x42   : > { %s633_s27 = scalar_lea.hbm %s4571_s8, %s3485_s1  ;;  %s637_s18 = sshll.u32 %s629_s25, 4  ;;  %s638_s18 = int_to_ptr.vmem [resolvable:$true] %s637_s18 }
  0x43   : > { %s635_s9 = sshll.u32 %s633_s27, 4  ;;  %s3508_s0 = sadd.s32 4294967295, %s3264_s21   ;;  %s636_s9 = int_to_ptr.hbm [resolvable:$true] %s635_s9 }
  0x44   : > { %2629 = dma.hbm_to_vmem [thread:$0]  (!%p3449_p6), %s636_s9, 32, %s638_s18, %s4532_s5  }
  0x45   : > { %s73_s27 = sadd.s32 1, %s3244_s16  ;;  %p86_p11 = scmp.ne.s32.totalorder %s3240_s15, %s3236_s14 }
  0x46   : > { %s4573_s25 = sld [smem:[#allocation32_spill]]  ;;  %p66_p12 = scmp.ge.s32.totalorder %s4632_s2, 2 }
  0x47   : > { %p87_p13 = scmp.eq.s32.totalorder %s3508_s0, 0  ;;  %p3523_p2 = por %p81_p0, %p80_p10 }
  0x48   : > { %s96_s9 = ssub.s32 %s3256_s19, %s4630_s22  ;;  %s4575_s5 = sld [smem:[#allocation31_spill]] }
  0x49   : > { %s4634_s2 = smov (%p66_p12, %s4632_s2), 0  ;;  %p3531_p1 = por %p87_p13, %p86_p11 }
  0x4a   : > { %4576 = sst [smem:[#allocation41_spill]] %s4634_s2  ;;  %p99_p4 = scmp.eq.s32.totalorder %s96_s9, 0 }
  0x4b   : > { %s68_s23 = ssub.s32 %s3260_s20, %s4634_s2  ;;  %p3540_p7 = por %p114_p3, %p87_p13 }
  0x4c   : > { %p71_p0 = scmp.eq.s32.totalorder %s68_s23, 0  ;;  %s364_s26 = sor.u32 %s96_s9, %s68_s23 }
  0x4d   : > { %s4579_s3 = sadd.s32 1, %s3232_s30  ;;  %p365_p8 = scmp.eq.s32.totalorder %s364_s26, 0 }
  0x4e   : > { %s3547_s6 = scalar_select %p99_p4, %s3232_s30, %s4579_s3  }
  0x4f   : > { %s3550_s8 = scalar_select %p71_p0, %s3244_s16, %s73_s27  }
  0x50   : > { %4580 = sst [smem:[#allocation42_spill]] %s3547_s6  ;;  %s367_s22 = sadd.s32 1, %s4572_s4 }
  0x51   : > { %4581 = sst [smem:[#allocation43_spill]] %s3550_s8  ;;  %p377_p10 = scmp.ne.s32.totalorder %s4572_s4, %s4573_s25 }
  0x52   : > { %p378_p11 = scmp.eq.s32.totalorder %s3508_s0, 3  ;;  %s4636_s4 = smov (!%p365_p8, %s4572_s4), %s367_s22 }
  0x53   : > { %4582 = sst [smem:[#allocation44_spill]] %s4636_s4  ;;  %p383_p12 = scmp.ne.s32.totalorder %s4573_s25, %s4575_s5 }
  0x54   : > { %p3559_p3 = por %p378_p11, %p377_p10  ;;  %s4584_s9 = sadd.s32 4294967294, %s3264_s21  }
  0x55   : > { %p384_p13 = scmp.eq.s32.totalorder %s4584_s9, 3  ;;  %s460_s3 = sand.u32 1, %s3244_s16  }
  0x56   : > { %s2512_s27 = sshll.u32 %s460_s3, 6  ;;  %s2571_s23 = sshll.u32 %s3260_s20, 6 }
  0x57   : > { %p3568_p4 = por %p384_p13, %p383_p12  ;;  %s464_s2 = scalar_lea.vmem [#allocation5], %s2512_s27 }
  0x58   : > { %s475_s22 = sshll.u32 %s464_s2, 4  ;;  %s4586_s6 = sld [smem:[#allocation45_spill]]  ;;  %s476_s22 = int_to_ptr.vmem [resolvable:$true] %s475_s22 }
  0x59   : > { %p2606_p0 = pnand %p2643_p5, %p3523_p2  ;;  %s4587_s16 = sld [smem:[#allocation47_spill]] }
  0x5a   : > { %s461_s27 = scalar_lea.sflag [#allocation6], %s460_s3  ;;  %s4588_s2 = smov 32  }
  0x5b   : > { %s4589_s4 = smov 512   ;;  %s514_s8 = scalar_lea.vmem [#allocation10], %s3437_s12 }
  0x5c   : > { %s4590_s19 = scalar_lea.sflag [#allocation9], %s3432_s11  ;;  %s4591_s18 = sld [smem:[#allocation49_spill]] }
  0x5d   : > { %s4593_s9 = sld [smem:[#allocation52_spill]] }
  0x5e   : > { %s472_s30 = scalar_lea.hbm %s4586_s6, %s2571_s23 }
  0x5f   : > { %s473_s5 = sshll.u32 %s472_s30, 4  ;;  %s522_s20 = scalar_lea.hbm %s4587_s16, %s3440_s24  ;;  %s474_s5 = int_to_ptr.hbm [resolvable:$true] %s473_s5 }
  0x60   : > { %2608 = dma.hbm_to_vmem [thread:$0]  (!%p2606_p0), %s474_s5, 1024, %s476_s22, %s461_s27, %s4589_s4, %s4589_s4, %s4588_s2  }
  0x61   : > { %s523_s6 = sshll.u32 %s522_s20, 4  ;;  %s525_s30 = sshll.u32 %s514_s8, 4  ;;  %s524_s6 = int_to_ptr.hbm [resolvable:$true] %s523_s6  ;;  %s526_s30 = int_to_ptr.vmem [resolvable:$true] %s525_s30 }
  0x62   : > { %2614 = dma.hbm_to_vmem [thread:$0]  (!%p3449_p6), %s524_s6, 16384, %s526_s30, %s4590_s19, %s4589_s4, %s4589_s4, %s4588_s2  }
  0x63   : > { %s568_s3 = scalar_lea.hbm %s4591_s18, %s3485_s1  ;;  %s564_s20 = scalar_lea.vmem [#allocation13], %s3482_s17 }
  0x64   : > { %s570_s23 = sshll.u32 %s568_s3, 4  ;;  %s572_s12 = sshll.u32 %s564_s20, 4  ;;  %s571_s23 = int_to_ptr.hbm [resolvable:$true] %s570_s23  ;;  %s573_s12 = int_to_ptr.vmem [resolvable:$true] %s572_s12 }
  0x65   : > { %s4592_s22 = scalar_lea.sflag [#allocation12], %s3432_s11  ;;  %s614_s27 = scalar_lea.hbm %s4593_s9, %s3485_s1 }
  0x66   : > { %2620 = dma.hbm_to_vmem [thread:$0]  (!%p3449_p6), %s571_s23, 32, %s573_s12, %s4592_s22  }
  0x67   : > { %s616_s4 = sshll.u32 %s614_s27, 4  ;;  %s610_s2 = scalar_lea.vmem [#allocation16], %s3482_s17  ;;  %s617_s4 = int_to_ptr.hbm [resolvable:$true] %s616_s4 }
  0x68   : > { %s618_s6 = sshll.u32 %s610_s2, 4  ;;  %s4594_s8 = scalar_lea.sflag [#allocation15], %s3432_s11  ;;  %s619_s6 = int_to_ptr.vmem [resolvable:$true] %s618_s6 }
  0x69   : > { %2626 = dma.hbm_to_vmem [thread:$0]  (!%p3449_p6), %s617_s4, 32, %s619_s6, %s4594_s8  }
  0x6a   : > { %s4595_s16 = sld [smem:[#allocation55_spill]]  ;;  %s656_s3 = scalar_lea.vmem [#allocation19], %s3482_s17 }
  0x6b   : > { %s664_s20 = sshll.u32 %s656_s3, 4  ;;  %s4596_s23 = scalar_lea.sflag [#allocation18], %s3432_s11  ;;  %s665_s20 = int_to_ptr.vmem [resolvable:$true] %s664_s20 }
  0x6c   : > { %s675_s12 = sand.u32 (!%p3463_p9), 1, %s3240_s15  }
  0x6d   : > { %s2539_s22 = sshll.u32 (!%p3463_p9), %s675_s12, 6  ;;  %s676_s5 = scalar_lea.sflag (!%p3463_p9), [#allocation6], %s675_s12 }
  0x6e   : > { %673 = sbr.rel (%p3463_p9) target bundleno = 699 (0x2bb), region = 64  ;;  %s3625_s25 = scalar_lea.vmem (!%p3463_p9), [#allocation5], %s2539_s22 }
  0x70   : > { %s660_s24 = scalar_lea.hbm %s4595_s16, %s3485_s1 }
  0x71   : > { %s662_s18 = sshll.u32 %s660_s24, 4  ;;  %s663_s18 = int_to_ptr.hbm [resolvable:$true] %s662_s18 }
  0x72   : > { %2632 = dma.hbm_to_vmem [thread:$0]  (!%p3449_p6), %s663_s18, 32, %s665_s20, %s4596_s23  }
  0x73   : > { %3183 = dma.done.wait (%p3531_p1), %s676_s5, 1024  }
  0x74   : > { %3185 = vsyncadd (%p3531_p1), %s676_s5, 4294966272  ;;  %s3632_s11 = sand.u32 1, %s3508_s0   ;;  %s687_s13 = sand.u32 1, %s3228_s29  }
  0x75   : > { %s2540_s10 = sshll.u32 %s687_s13, 10  ;;  %s686_s17 = scalar_lea.sflag [#allocation9], %s3632_s11 }
  0x76   : > { %s3636_s1 = scalar_lea.vmem [#allocation8], %s2540_s10 }
  0x77   : > { %3187 = dma.done.wait (%p3540_p7), %s686_s17, 32768  }
  0x78   : > { %3189 = vsyncadd (%p3540_p7), %s686_s17, 4294934528  ;;  %s3642_s14 = scalar_lea.vmem [#allocation10], %s2540_s10  ;;  %s706_s9 = scalar_lea.sflag [#allocation12], %s3632_s11 }
  0x79   : > { %s3645_s27 = scalar_lea.vmem [#allocation11], %s2540_s10 }
  0x7a   : > { %3191 = dma.done.wait (%p3540_p7), %s706_s9, 16416  }
  0x7b   : > { %3193 = vsyncadd (%p3540_p7), %s706_s9, 4294950880  ;;  %s3651_s0 = sshll.u32 %s687_s13, 1  ;;  %s726_s2 = scalar_lea.sflag [#allocation15], %s3632_s11 }
  0x7c   : > { %s719_s4 = scalar_lea.vmem [#allocation13], %s3651_s0  ;;  %s729_s6 = scalar_lea.vmem [#allocation14], %s3651_s0 }
  0x7d   : > { %3195 = dma.done.wait (%p3540_p7), %s726_s2, 64  }
  0x7e   : > { %3197 = vsyncadd (%p3540_p7), %s726_s2, 4294967232  ;;  %s739_s8 = scalar_lea.vmem [#allocation16], %s3651_s0  ;;  %s746_s30 = scalar_lea.sflag [#allocation18], %s3632_s11 }
  0x7f   : > { %s749_s19 = scalar_lea.vmem [#allocation17], %s3651_s0 }
  0x80   : > { %3199 = dma.done.wait (%p3540_p7), %s746_s30, 64  }
  0x81   : > { %3201 = vsyncadd (%p3540_p7), %s746_s30, 4294967232  ;;  %v980_v0 = vld [vmem:[%s3636_s1 + $0x1f0] sm:$0xff]  ;;  %v981_v1 = vld [vmem:[%s3636_s1 + $0x1f8] sm:$0xff]  ;;  %s3268_s7 = smov 1   ;;  %s3269_s16 = smov 127  }
  0x82   : > { %v978_v2 = vld [vmem:[%s3636_s1 + $0x1e0] sm:$0xff]  ;;  %1092 = vmatpush.xpose.msra.mxu2 %v980_v0  ;;  %1115 = vmatpush.xpose.msra.mxu3 %v981_v1  ;;  %v979_v3 = vld [vmem:[%s3636_s1 + $0x1e8] sm:$0xff]  ;;  %v976_v4 = vld [vmem:[%s3636_s1 + $0x1d0] sm:$0xff]  ;;  %s4597_s24 = sld [smem:[#allocation36_spill]] }
  0x83   : > { %1046 = vmatpush.xpose.msra.mxu0 %v978_v2  ;;  %1069 = vmatpush.xpose.msra.mxu1 %v979_v3  ;;  %v977_v5 = vld [vmem:[%s3636_s1 + $0x1d8] sm:$0xff]  ;;  %v974_v6 = vld [vmem:[%s3636_s1 + $0x1c0] sm:$0xff]  ;;  %v975_v7 = vld [vmem:[%s3636_s1 + $0x1c8] sm:$0xff]  ;;  %s4598_s12 = sld [smem:[#allocation50_spill]] }
  0x84   : > { %v972_v8 = vld [vmem:[%s3636_s1 + $0x1b0] sm:$0xff]  ;;  %v973_v9 = vld [vmem:[%s3636_s1 + $0x1b8] sm:$0xff]  ;;  %v970_v10 = vld [vmem:[%s3636_s1 + $0x1a0] sm:$0xff]  ;;  %s4599_s10 = sld [smem:[#allocation54_spill]] }
  0x85   : > { %v971_v11 = vld [vmem:[%s3636_s1 + $0x1a8] sm:$0xff]  ;;  %v968_v12 = vld [vmem:[%s3636_s1 + $0x190] sm:$0xff]  ;;  %v969_v13 = vld [vmem:[%s3636_s1 + $0x198] sm:$0xff]  ;;  %s4605_s2 = sld [smem:[#allocation37_spill]] }
  0x86   : > { %1093 = vmatpush.xpose.msra.mxu2 %v976_v4  ;;  %1116 = vmatpush.xpose.msra.mxu3 %v977_v5  ;;  %v966_v14 = vld [vmem:[%s3636_s1 + $0x180] sm:$0xff]  ;;  %v967_v15 = vld [vmem:[%s3636_s1 + $0x188] sm:$0xff]  ;;  %v964_v16 = vld [vmem:[%s3636_s1 + $0x170] sm:$0xff] }
  0x87   : > { %1047 = vmatpush.xpose.msra.mxu0 %v974_v6  ;;  %1070 = vmatpush.xpose.msra.mxu1 %v975_v7  ;;  %v965_v17 = vld [vmem:[%s3636_s1 + $0x178] sm:$0xff]  ;;  %v962_v18 = vld [vmem:[%s3636_s1 + $0x160] sm:$0xff]  ;;  %v963_v19 = vld [vmem:[%s3636_s1 + $0x168] sm:$0xff] }
  0x88   : > { %v960_v20 = vld [vmem:[%s3636_s1 + $0x150] sm:$0xff]  ;;  %v961_v21 = vld [vmem:[%s3636_s1 + $0x158] sm:$0xff]  ;;  %v958_v22 = vld [vmem:[%s3636_s1 + $0x140] sm:$0xff]  ;;  %s4062_s18 = sshll.u32 %s4597_s24, 1 }
  0x89   : > { %v959_v23 = vld [vmem:[%s3636_s1 + $0x148] sm:$0xff]  ;;  %v956_v24 = vld [vmem:[%s3636_s1 + $0x130] sm:$0xff]  ;;  %v957_v25 = vld [vmem:[%s3636_s1 + $0x138] sm:$0xff]  ;;  %p871_p5 = scmp.lt.s32.totalorder %s4062_s18, 3 }
  0x8a   : > { %1094 = vmatpush.xpose.msra.mxu2 %v972_v8  ;;  %1117 = vmatpush.xpose.msra.mxu3 %v973_v9  ;;  %v954_v26 = vld [vmem:[%s3636_s1 + $0x120] sm:$0xff]  ;;  %v955_v27 = vld [vmem:[%s3636_s1 + $0x128] sm:$0xff]  ;;  %v952_v28 = vld [vmem:[%s3636_s1 + $0x110] sm:$0xff] }
  0x8b   : > { %1048 = vmatpush.xpose.msra.mxu0 %v970_v10  ;;  %1071 = vmatpush.xpose.msra.mxu1 %v971_v11  ;;  %v953_v29 = vld [vmem:[%s3636_s1 + $0x118] sm:$0xff]  ;;  %v950_v30 = vld [vmem:[%s3636_s1 + $0x100] sm:$0xff]  ;;  %v951_v31 = vld [vmem:[%s3636_s1 + $0x108] sm:$0xff]  ;;  %s4074_s3 = scalar_select %p871_p5, %s4062_s18, 3 }
  0x8c   : > { %v948_v32 = vld [vmem:[%s3636_s1 + $0xf0] sm:$0xff]  ;;  %v949_v33 = vld [vmem:[%s3636_s1 + $0xf8] sm:$0xff]  ;;  %v946_v34 = vld [vmem:[%s3636_s1 + $0xe0] sm:$0xff] }
  0x8d   : > { %v947_v35 = vld [vmem:[%s3636_s1 + $0xe8] sm:$0xff]  ;;  %v944_v36 = vld [vmem:[%s3636_s1 + $0xd0] sm:$0xff]  ;;  %v945_v37 = vld [vmem:[%s3636_s1 + $0xd8] sm:$0xff]  ;;  %s873_s22 = scalar_lea.vmem %s4598_s12, %s4074_s3  ;;  %s881_s17 = scalar_lea.vmem %s4599_s10, %s4074_s3 }
  0x8e   : > { %1095 = vmatpush.xpose.msra.mxu2 %v968_v12  ;;  %1118 = vmatpush.xpose.msra.mxu3 %v969_v13  ;;  %v942_v38 = vld [vmem:[%s3636_s1 + $0xc0] sm:$0xff]  ;;  %v943_v39 = vld [vmem:[%s3636_s1 + $0xc8] sm:$0xff]  ;;  %v940_v40 = vld [vmem:[%s3636_s1 + $0xb0] sm:$0xff]  ;;  %s4608_s12 = sld [smem:[#allocation58_spill]] }
  0x8f   : > { %1049 = vmatpush.xpose.msra.mxu0 %v966_v14  ;;  %1072 = vmatpush.xpose.msra.mxu1 %v967_v15  ;;  %v941_v41 = vld [vmem:[%s3636_s1 + $0xb8] sm:$0xff]  ;;  %v938_v42 = vld [vmem:[%s3636_s1 + $0xa0] sm:$0xff]  ;;  %v939_v43 = vld [vmem:[%s3636_s1 + $0xa8] sm:$0xff] }
  0x90   : > { %v936_v44 = vld [vmem:[%s3636_s1 + $0x90] sm:$0xff]  ;;  %v937_v45 = vld [vmem:[%s3636_s1 + $0x98] sm:$0xff]  ;;  %v934_v46 = vld [vmem:[%s3636_s1 + $0x80] sm:$0xff] }
  0x91   : > { %v935_v47 = vld [vmem:[%s3636_s1 + $0x88] sm:$0xff]  ;;  %v932_v48 = vld [vmem:[%s3636_s1 + $0x70] sm:$0xff]  ;;  %v933_v49 = vld [vmem:[%s3636_s1 + $0x78] sm:$0xff] }
  0x92   : > { %1096 = vmatpush.xpose.msra.mxu2 %v964_v16  ;;  %1119 = vmatpush.xpose.msra.mxu3 %v965_v17  ;;  %v930_v50 = vld [vmem:[%s3636_s1 + $0x60] sm:$0xff]  ;;  %v931_v51 = vld [vmem:[%s3636_s1 + $0x68] sm:$0xff]  ;;  %v928_v52 = vld [vmem:[%s3636_s1 + $0x50] sm:$0xff] }
  0x93   : > { %1050 = vmatpush.xpose.msra.mxu0 %v962_v18  ;;  %1073 = vmatpush.xpose.msra.mxu1 %v963_v19  ;;  %v929_v53 = vld [vmem:[%s3636_s1 + $0x58] sm:$0xff]  ;;  %v926_v54 = vld [vmem:[%s3636_s1 + $0x40] sm:$0xff]  ;;  %v927_v55 = vld [vmem:[%s3636_s1 + $0x48] sm:$0xff] }
  0x94   : > { %v924_v56 = vld [vmem:[%s3636_s1 + $0x30] sm:$0xff]  ;;  %v925_v57 = vld [vmem:[%s3636_s1 + $0x38] sm:$0xff]  ;;  %v922_v58 = vld [vmem:[%s3636_s1 + $0x20] sm:$0xff] }
  0x95   : > { %v923_v59 = vld [vmem:[%s3636_s1 + $0x28] sm:$0xff]  ;;  %v920_v60 = vld [vmem:[%s3636_s1 + $0x10] sm:$0xff]  ;;  %v921_v61 = vld [vmem:[%s3636_s1 + $0x18] sm:$0xff] }
  0x96   : > { %1097 = vmatpush.xpose.msra.mxu2 %v960_v20  ;;  %1120 = vmatpush.xpose.msra.mxu3 %v961_v21  ;;  %v1044_v62 = vld [vmem:[%s3636_s1 + $0x3f0] sm:$0xff]  ;;  %v1045_v63 = vld [vmem:[%s3636_s1 + $0x3f8] sm:$0xff]  ;;  %v918_v0 = vld [vmem:[%s3636_s1] sm:$0xff] }
  0x97   : > { %1051 = vmatpush.xpose.msra.mxu0 %v958_v22  ;;  %1074 = vmatpush.xpose.msra.mxu1 %v959_v23  ;;  %v919_v1 = vld [vmem:[%s3636_s1 + $0x8] sm:$0xff]  ;;  %v1042_v2 = vld [vmem:[%s3636_s1 + $0x3e0] sm:$0xff]  ;;  %v1040_v4 = vld [vmem:[%s3636_s1 + $0x3d0] sm:$0xff] }
  0x98   : > { %v1043_v3 = vld [vmem:[%s3636_s1 + $0x3e8] sm:$0xff]  ;;  %v1041_v5 = vld [vmem:[%s3636_s1 + $0x3d8] sm:$0xff]  ;;  %v1038_v6 = vld [vmem:[%s3636_s1 + $0x3c0] sm:$0xff] }
  0x99   : > { %v1039_v7 = vld [vmem:[%s3636_s1 + $0x3c8] sm:$0xff]  ;;  %v1036_v8 = vld [vmem:[%s3636_s1 + $0x3b0] sm:$0xff]  ;;  %v1037_v9 = vld [vmem:[%s3636_s1 + $0x3b8] sm:$0xff] }
  0x9a   : > { %1098 = vmatpush.xpose.msra.mxu2 %v956_v24  ;;  %1121 = vmatpush.xpose.msra.mxu3 %v957_v25  ;;  %v1034_v10 = vld [vmem:[%s3636_s1 + $0x3a0] sm:$0xff]  ;;  %v1035_v11 = vld [vmem:[%s3636_s1 + $0x3a8] sm:$0xff]  ;;  %v1032_v12 = vld [vmem:[%s3636_s1 + $0x390] sm:$0xff] }
  0x9b   : > { %1052 = vmatpush.xpose.msra.mxu0 %v954_v26  ;;  %1075 = vmatpush.xpose.msra.mxu1 %v955_v27  ;;  %v1033_v13 = vld [vmem:[%s3636_s1 + $0x398] sm:$0xff]  ;;  %v1030_v14 = vld [vmem:[%s3636_s1 + $0x380] sm:$0xff]  ;;  %v1031_v15 = vld [vmem:[%s3636_s1 + $0x388] sm:$0xff] }
  0x9c   : > { %v3748_v16 = vld [vmem:[%s3625_s25 + $0x10] sm:$0xff]  ;;  %v1029_v18 = vld [vmem:[%s3636_s1 + $0x378] sm:$0xff]  ;;  %v1026_v19 = vld [vmem:[%s3636_s1 + $0x360] sm:$0xff] }
  0x9d   : > { %v1028_v17 = vld [vmem:[%s3636_s1 + $0x370] sm:$0xff]  ;;  %v1027_v20 = vld [vmem:[%s3636_s1 + $0x368] sm:$0xff]  ;;  %v3756_v21 = vld [vmem:[%s3625_s25 + $0x18] sm:$0xff] }
  0x9e   : > { %1099 = vmatpush.xpose.msra.mxu2 %v952_v28  ;;  %1122 = vmatpush.xpose.msra.mxu3 %v953_v29  ;;  %v3759_v22 = vld [vmem:[%s3625_s25] sm:$0xff]  ;;  %v1024_v23 = vld [vmem:[%s3636_s1 + $0x350] sm:$0xff]  ;;  %v1025_v24 = vld [vmem:[%s3636_s1 + $0x358] sm:$0xff] }
  0x9f   : > { %1053 = vmatpush.xpose.msra.mxu0 %v950_v30  ;;  %1076 = vmatpush.xpose.msra.mxu1 %v951_v31  ;;  %v3766_v25 = vld [vmem:[%s3625_s25 + $0x8] sm:$0xff]  ;;  %v1022_v26 = vld [vmem:[%s3636_s1 + $0x340] sm:$0xff]  ;;  %v3772_v28 = vld [vmem:[%s3625_s25 + $0x30] sm:$0xff] }
  0xa0   : > { %v1023_v27 = vld [vmem:[%s3636_s1 + $0x348] sm:$0xff]  ;;  %v1020_v29 = vld [vmem:[%s3636_s1 + $0x330] sm:$0xff]  ;;  %v1021_v30 = vld [vmem:[%s3636_s1 + $0x338] sm:$0xff] }
  0xa1   : > { %v1018_v31 = vld [vmem:[%s3636_s1 + $0x320] sm:$0xff] }
  0xa2   : > { %1100 = vmatpush.xpose.msra.mxu2 %v948_v32  ;;  %1123 = vmatpush.xpose.msra.mxu3 %v949_v33  ;;  %v1019_v32 = vld [vmem:[%s3636_s1 + $0x328] sm:$0xff]  ;;  %v3780_v33 = vld [vmem:[%s3625_s25 + $0x38] sm:$0xff] }
  0xa3   : > { %1054 = vmatpush.xpose.msra.mxu0 %v946_v34  ;;  %1077 = vmatpush.xpose.msra.mxu1 %v947_v35  ;;  %v3783_v34 = vld [vmem:[%s3625_s25 + $0x20] sm:$0xff]  ;;  %v1016_v35 = vld [vmem:[%s3636_s1 + $0x310] sm:$0xff] }
  0xa6   : > { %1101 = vmatpush.xpose.msra.mxu2 %v944_v36  ;;  %1124 = vmatpush.xpose.msra.mxu3 %v945_v37  ;;  %v1017_v36 = vld [vmem:[%s3636_s1 + $0x318] sm:$0xff]  ;;  %v3790_v37 = vld [vmem:[%s3625_s25 + $0x28] sm:$0xff] }
  0xa7   : > { %1055 = vmatpush.xpose.msra.mxu0 %v942_v38  ;;  %1078 = vmatpush.xpose.msra.mxu1 %v943_v39  ;;  %v1014_v38 = vld [vmem:[%s3636_s1 + $0x300] sm:$0xff]  ;;  %v1015_v39 = vld [vmem:[%s3636_s1 + $0x308] sm:$0xff] }
  0xaa   : > { %1102 = vmatpush.xpose.msra.mxu2 %v940_v40  ;;  %1125 = vmatpush.xpose.msra.mxu3 %v941_v41  ;;  %v1012_v40 = vld [vmem:[%s3636_s1 + $0x2f0] sm:$0xff]  ;;  %v1013_v41 = vld [vmem:[%s3636_s1 + $0x2f8] sm:$0xff] }
  0xab   : > { %1056 = vmatpush.xpose.msra.mxu0 %v938_v42  ;;  %1079 = vmatpush.xpose.msra.mxu1 %v939_v43  ;;  %v1010_v42 = vld [vmem:[%s3636_s1 + $0x2e0] sm:$0xff]  ;;  %v1011_v43 = vld [vmem:[%s3636_s1 + $0x2e8] sm:$0xff] }
  0xae   : > { %1103 = vmatpush.xpose.msra.mxu2 %v936_v44  ;;  %1126 = vmatpush.xpose.msra.mxu3 %v937_v45  ;;  %v1008_v44 = vld [vmem:[%s3636_s1 + $0x2d0] sm:$0xff]  ;;  %v1009_v45 = vld [vmem:[%s3636_s1 + $0x2d8] sm:$0xff] }
  0xaf   : > { %1057 = vmatpush.xpose.msra.mxu0 %v934_v46  ;;  %1080 = vmatpush.xpose.msra.mxu1 %v935_v47  ;;  %v1006_v46 = vld [vmem:[%s3636_s1 + $0x2c0] sm:$0xff]  ;;  %v1007_v47 = vld [vmem:[%s3636_s1 + $0x2c8] sm:$0xff] }
  0xb2   : > { %1104 = vmatpush.xpose.msra.mxu2 %v932_v48  ;;  %1127 = vmatpush.xpose.msra.mxu3 %v933_v49  ;;  %v1004_v48 = vld [vmem:[%s3636_s1 + $0x2b0] sm:$0xff]  ;;  %v1005_v49 = vld [vmem:[%s3636_s1 + $0x2b8] sm:$0xff] }
  0xb3   : > { %1058 = vmatpush.xpose.msra.mxu0 %v930_v50  ;;  %1081 = vmatpush.xpose.msra.mxu1 %v931_v51  ;;  %v1002_v50 = vld [vmem:[%s3636_s1 + $0x2a0] sm:$0xff]  ;;  %v1003_v51 = vld [vmem:[%s3636_s1 + $0x2a8] sm:$0xff] }
  0xb6   : > { %1105 = vmatpush.xpose.msra.mxu2 %v928_v52  ;;  %1128 = vmatpush.xpose.msra.mxu3 %v929_v53  ;;  %v1000_v52 = vld [vmem:[%s3636_s1 + $0x290] sm:$0xff]  ;;  %v1001_v53 = vld [vmem:[%s3636_s1 + $0x298] sm:$0xff] }
  0xb7   : > { %1059 = vmatpush.xpose.msra.mxu0 %v926_v54  ;;  %1082 = vmatpush.xpose.msra.mxu1 %v927_v55  ;;  %v998_v54 = vld [vmem:[%s3636_s1 + $0x280] sm:$0xff]  ;;  %v999_v55 = vld [vmem:[%s3636_s1 + $0x288] sm:$0xff] }
  0xba   : > { %1106 = vmatpush.xpose.msra.mxu2 %v924_v56  ;;  %1129 = vmatpush.xpose.msra.mxu3 %v925_v57  ;;  %v996_v56 = vld [vmem:[%s3636_s1 + $0x270] sm:$0xff]  ;;  %v997_v57 = vld [vmem:[%s3636_s1 + $0x278] sm:$0xff] }
  0xbb   : > { %1060 = vmatpush.xpose.msra.mxu0 %v922_v58  ;;  %1083 = vmatpush.xpose.msra.mxu1 %v923_v59  ;;  %v994_v58 = vld [vmem:[%s3636_s1 + $0x260] sm:$0xff]  ;;  %v995_v59 = vld [vmem:[%s3636_s1 + $0x268] sm:$0xff] }
  0xbe   : > { %1107 = vmatpush.xpose.msra.mxu2 %v920_v60  ;;  %1130 = vmatpush.xpose.msra.mxu3 %v921_v61  ;;  %v992_v60 = vld [vmem:[%s3636_s1 + $0x250] sm:$0xff]  ;;  %v993_v61 = vld [vmem:[%s3636_s1 + $0x258] sm:$0xff] }
  0xbf   : > { %1061 = vmatpush.xpose.msra.mxu0 %v918_v0  ;;  %1084 = vmatpush.xpose.msra.mxu1 %v919_v1  ;;  %v988_v0 = vld [vmem:[%s3636_s1 + $0x230] sm:$0xff]  ;;  %v989_v1 = vld [vmem:[%s3636_s1 + $0x238] sm:$0xff] }
  0xc1   : > { %1108 = vmatmul.f32.vlgmr.msra.gmra.mxu2 %v3748_v16  ;;  %1131 = vmatmul.f32.vlgmr.msra.gmra.mxu3 %v3756_v21 }
  0xc2   : > { %1184 = vmatpush.xpose.msrb.mxu2 %v1044_v62  ;;  %1207 = vmatpush.xpose.msrb.mxu3 %v1045_v63  ;;  %v990_v62 = vld [vmem:[%s3636_s1 + $0x240] sm:$0xff]  ;;  %v991_v63 = vld [vmem:[%s3636_s1 + $0x248] sm:$0xff] }
  0xc3   : > { %1138 = vmatpush.xpose.msrb.mxu0 %v1042_v2  ;;  %1161 = vmatpush.xpose.msrb.mxu1 %v1043_v3  ;;  %v986_v2 = vld [vmem:[%s3636_s1 + $0x220] sm:$0xff]  ;;  %v987_v3 = vld [vmem:[%s3636_s1 + $0x228] sm:$0xff] }
  0xc4   : > { %1062 = vmatmul.f32.vlgmr.msra.gmra.mxu0 %v3759_v22  ;;  %1085 = vmatmul.f32.vlgmr.msra.gmra.mxu1 %v3766_v25 }
  0xc6   : > { %1185 = vmatpush.xpose.msrb.mxu2 %v1040_v4  ;;  %1208 = vmatpush.xpose.msrb.mxu3 %v1041_v5  ;;  %v984_v4 = vld [vmem:[%s3636_s1 + $0x210] sm:$0xff]  ;;  %v985_v5 = vld [vmem:[%s3636_s1 + $0x218] sm:$0xff] }
  0xc7   : > { %1139 = vmatpush.xpose.msrb.mxu0 %v1038_v6  ;;  %1162 = vmatpush.xpose.msrb.mxu1 %v1039_v7  ;;  %v1304_v6 = vld [vmem:[%s3642_s14 + $0x1f0] sm:$0xff]  ;;  %v1305_v7 = vld [vmem:[%s3642_s14 + $0x1f8] sm:$0xff] }
  0xc9   : > { %1111 = vmatmul.f32.gmra.mxu2 %v3772_v28  ;;  %1134 = vmatmul.f32.gmra.mxu3 %v3780_v33 }
  0xca   : > { %1186 = vmatpush.xpose.msrb.mxu2 %v1036_v8  ;;  %1209 = vmatpush.xpose.msrb.mxu3 %v1037_v9  ;;  %v982_v8 = vld [vmem:[%s3636_s1 + $0x200] sm:$0xff]  ;;  %v983_v9 = vld [vmem:[%s3636_s1 + $0x208] sm:$0xff] }
  0xcb   : > { %1140 = vmatpush.xpose.msrb.mxu0 %v1034_v10  ;;  %1163 = vmatpush.xpose.msrb.mxu1 %v1035_v11  ;;  %v1302_v10 = vld [vmem:[%s3642_s14 + $0x1e0] sm:$0xff]  ;;  %v1303_v11 = vld [vmem:[%s3642_s14 + $0x1e8] sm:$0xff] }
  0xcc   : > { %1065 = vmatmul.f32.gmra.mxu0 %v3783_v34  ;;  %1088 = vmatmul.f32.gmra.mxu1 %v3790_v37 }
  0xce   : > { %1187 = vmatpush.xpose.msrb.mxu2 %v1032_v12  ;;  %1210 = vmatpush.xpose.msrb.mxu3 %v1033_v13  ;;  %v1300_v12 = vld [vmem:[%s3642_s14 + $0x1d0] sm:$0xff]  ;;  %v1301_v13 = vld [vmem:[%s3642_s14 + $0x1d8] sm:$0xff] }
  0xcf   : > { %1141 = vmatpush.xpose.msrb.mxu0 %v1030_v14  ;;  %1164 = vmatpush.xpose.msrb.mxu1 %v1031_v15  ;;  %v1298_v14 = vld [vmem:[%s3642_s14 + $0x1c0] sm:$0xff]  ;;  %v1299_v15 = vld [vmem:[%s3642_s14 + $0x1c8] sm:$0xff] }
  0xd2   : > { %1188 = vmatpush.xpose.msrb.mxu2 %v1028_v17  ;;  %1211 = vmatpush.xpose.msrb.mxu3 %v1029_v18  ;;  %v1296_v17 = vld [vmem:[%s3642_s14 + $0x1b0] sm:$0xff]  ;;  %v1297_v18 = vld [vmem:[%s3642_s14 + $0x1b8] sm:$0xff] }
  0xd3   : > { %1142 = vmatpush.xpose.msrb.mxu0 %v1026_v19  ;;  %1165 = vmatpush.xpose.msrb.mxu1 %v1027_v20  ;;  %v1294_v19 = vld [vmem:[%s3642_s14 + $0x1a0] sm:$0xff]  ;;  %v1295_v20 = vld [vmem:[%s3642_s14 + $0x1a8] sm:$0xff] }
  0xd6   : > { %1189 = vmatpush.xpose.msrb.mxu2 %v1024_v23  ;;  %1212 = vmatpush.xpose.msrb.mxu3 %v1025_v24  ;;  %v1292_v23 = vld [vmem:[%s3642_s14 + $0x190] sm:$0xff]  ;;  %v1293_v24 = vld [vmem:[%s3642_s14 + $0x198] sm:$0xff] }
  0xd7   : > { %1143 = vmatpush.xpose.msrb.mxu0 %v1022_v26  ;;  %1166 = vmatpush.xpose.msrb.mxu1 %v1023_v27  ;;  %v1290_v26 = vld [vmem:[%s3642_s14 + $0x180] sm:$0xff]  ;;  %v1291_v27 = vld [vmem:[%s3642_s14 + $0x188] sm:$0xff] }
  0xda   : > { %1190 = vmatpush.xpose.msrb.mxu2 %v1020_v29  ;;  %1213 = vmatpush.xpose.msrb.mxu3 %v1021_v30  ;;  %v1288_v29 = vld [vmem:[%s3642_s14 + $0x170] sm:$0xff]  ;;  %v1289_v30 = vld [vmem:[%s3642_s14 + $0x178] sm:$0xff] }
  0xdb   : > { %1144 = vmatpush.xpose.msrb.mxu0 %v1018_v31  ;;  %1167 = vmatpush.xpose.msrb.mxu1 %v1019_v32  ;;  %v1286_v31 = vld [vmem:[%s3642_s14 + $0x160] sm:$0xff]  ;;  %v1287_v32 = vld [vmem:[%s3642_s14 + $0x168] sm:$0xff] }
  0xde   : > { %1191 = vmatpush.xpose.msrb.mxu2 %v1016_v35  ;;  %1214 = vmatpush.xpose.msrb.mxu3 %v1017_v36  ;;  %v1284_v35 = vld [vmem:[%s3642_s14 + $0x150] sm:$0xff]  ;;  %v1285_v36 = vld [vmem:[%s3642_s14 + $0x158] sm:$0xff] }
  0xdf   : > { %1145 = vmatpush.xpose.msrb.mxu0 %v1014_v38  ;;  %1168 = vmatpush.xpose.msrb.mxu1 %v1015_v39  ;;  %v1282_v38 = vld [vmem:[%s3642_s14 + $0x140] sm:$0xff]  ;;  %v1283_v39 = vld [vmem:[%s3642_s14 + $0x148] sm:$0xff] }
  0xe2   : > { %1192 = vmatpush.xpose.msrb.mxu2 %v1012_v40  ;;  %1215 = vmatpush.xpose.msrb.mxu3 %v1013_v41  ;;  %v1280_v40 = vld [vmem:[%s3642_s14 + $0x130] sm:$0xff]  ;;  %v1281_v41 = vld [vmem:[%s3642_s14 + $0x138] sm:$0xff] }
  0xe3   : > { %1146 = vmatpush.xpose.msrb.mxu0 %v1010_v42  ;;  %1169 = vmatpush.xpose.msrb.mxu1 %v1011_v43  ;;  %v1278_v42 = vld [vmem:[%s3642_s14 + $0x120] sm:$0xff]  ;;  %v1279_v43 = vld [vmem:[%s3642_s14 + $0x128] sm:$0xff] }
  0xe6   : > { %1193 = vmatpush.xpose.msrb.mxu2 %v1008_v44  ;;  %1216 = vmatpush.xpose.msrb.mxu3 %v1009_v45  ;;  %v1276_v44 = vld [vmem:[%s3642_s14 + $0x110] sm:$0xff]  ;;  %v1277_v45 = vld [vmem:[%s3642_s14 + $0x118] sm:$0xff] }
  0xe7   : > { %1147 = vmatpush.xpose.msrb.mxu0 %v1006_v46  ;;  %1170 = vmatpush.xpose.msrb.mxu1 %v1007_v47  ;;  %v1274_v46 = vld [vmem:[%s3642_s14 + $0x100] sm:$0xff]  ;;  %v1275_v47 = vld [vmem:[%s3642_s14 + $0x108] sm:$0xff] }
  0xea   : > { %1194 = vmatpush.xpose.msrb.mxu2 %v1004_v48  ;;  %1217 = vmatpush.xpose.msrb.mxu3 %v1005_v49  ;;  %v1272_v48 = vld [vmem:[%s3642_s14 + $0xf0] sm:$0xff]  ;;  %v1273_v49 = vld [vmem:[%s3642_s14 + $0xf8] sm:$0xff] }
  0xeb   : > { %1148 = vmatpush.xpose.msrb.mxu0 %v1002_v50  ;;  %1171 = vmatpush.xpose.msrb.mxu1 %v1003_v51  ;;  %v1270_v50 = vld [vmem:[%s3642_s14 + $0xe0] sm:$0xff]  ;;  %v1271_v51 = vld [vmem:[%s3642_s14 + $0xe8] sm:$0xff] }
  0xee   : > { %1195 = vmatpush.xpose.msrb.mxu2 %v1000_v52  ;;  %1218 = vmatpush.xpose.msrb.mxu3 %v1001_v53  ;;  %v1268_v52 = vld [vmem:[%s3642_s14 + $0xd0] sm:$0xff]  ;;  %v1269_v53 = vld [vmem:[%s3642_s14 + $0xd8] sm:$0xff] }
  0xef   : > { %1149 = vmatpush.xpose.msrb.mxu0 %v998_v54  ;;  %1172 = vmatpush.xpose.msrb.mxu1 %v999_v55  ;;  %v1266_v54 = vld [vmem:[%s3642_s14 + $0xc0] sm:$0xff]  ;;  %v1267_v55 = vld [vmem:[%s3642_s14 + $0xc8] sm:$0xff] }
  0xf2   : > { %1196 = vmatpush.xpose.msrb.mxu2 %v996_v56  ;;  %1219 = vmatpush.xpose.msrb.mxu3 %v997_v57  ;;  %v1264_v56 = vld [vmem:[%s3642_s14 + $0xb0] sm:$0xff]  ;;  %v1265_v57 = vld [vmem:[%s3642_s14 + $0xb8] sm:$0xff] }
  0xf3   : > { %1150 = vmatpush.xpose.msrb.mxu0 %v994_v58  ;;  %1173 = vmatpush.xpose.msrb.mxu1 %v995_v59  ;;  %v1262_v58 = vld [vmem:[%s3642_s14 + $0xa0] sm:$0xff]  ;;  %v1263_v59 = vld [vmem:[%s3642_s14 + $0xa8] sm:$0xff] }
  0xf6   : > { %1197 = vmatpush.xpose.msrb.mxu2 %v992_v60  ;;  %1220 = vmatpush.xpose.msrb.mxu3 %v993_v61  ;;  %v1260_v60 = vld [vmem:[%s3642_s14 + $0x90] sm:$0xff]  ;;  %v1261_v61 = vld [vmem:[%s3642_s14 + $0x98] sm:$0xff] }
  0xf7   : > { %1151 = vmatpush.xpose.msrb.mxu0 %v990_v62  ;;  %1174 = vmatpush.xpose.msrb.mxu1 %v991_v63  ;;  %v1258_v62 = vld [vmem:[%s3642_s14 + $0x80] sm:$0xff]  ;;  %v1259_v63 = vld [vmem:[%s3642_s14 + $0x88] sm:$0xff] }
  0xfa   : > { %1198 = vmatpush.xpose.msrb.mxu2 %v988_v0  ;;  %1221 = vmatpush.xpose.msrb.mxu3 %v989_v1  ;;  %v1256_v0 = vld [vmem:[%s3642_s14 + $0x70] sm:$0xff]  ;;  %v1257_v1 = vld [vmem:[%s3642_s14 + $0x78] sm:$0xff] }
  0xfb   : > { %1152 = vmatpush.xpose.msrb.mxu0 %v986_v2  ;;  %1175 = vmatpush.xpose.msrb.mxu1 %v987_v3  ;;  %v1254_v2 = vld [vmem:[%s3642_s14 + $0x60] sm:$0xff]  ;;  %v1255_v3 = vld [vmem:[%s3642_s14 + $0x68] sm:$0xff] }
  0xfe   : > { %1199 = vmatpush.xpose.msrb.mxu2 %v984_v4  ;;  %1222 = vmatpush.xpose.msrb.mxu3 %v985_v5  ;;  %v1252_v4 = vld [vmem:[%s3642_s14 + $0x50] sm:$0xff]  ;;  %v1253_v5 = vld [vmem:[%s3642_s14 + $0x58] sm:$0xff] }
  0xff   : > { %1153 = vmatpush.xpose.msrb.mxu0 %v982_v8  ;;  %1176 = vmatpush.xpose.msrb.mxu1 %v983_v9  ;;  %v1248_v8 = vld [vmem:[%s3642_s14 + $0x30] sm:$0xff]  ;;  %v1249_v9 = vld [vmem:[%s3642_s14 + $0x38] sm:$0xff] }
 0x101   : > { %1200 = vmatmul.f32.vlgmr.msrb.gmra.mxu2 %v3748_v16  ;;  %1223 = vmatmul.f32.vlgmr.msrb.gmra.mxu3 %v3756_v21 }
 0x102   : > { %1416 = vmatpush.xpose.msra.mxu2 %v1304_v6  ;;  %1439 = vmatpush.xpose.msra.mxu3 %v1305_v7  ;;  %v1250_v6 = vld [vmem:[%s3642_s14 + $0x40] sm:$0xff]  ;;  %v1251_v7 = vld [vmem:[%s3642_s14 + $0x48] sm:$0xff] }
 0x103   : > { %1370 = vmatpush.xpose.msra.mxu0 %v1302_v10  ;;  %1393 = vmatpush.xpose.msra.mxu1 %v1303_v11  ;;  %v1246_v10 = vld [vmem:[%s3642_s14 + $0x20] sm:$0xff]  ;;  %v1247_v11 = vld [vmem:[%s3642_s14 + $0x28] sm:$0xff] }
 0x104   : > { %1154 = vmatmul.f32.vlgmr.msrb.gmra.mxu0 %v3759_v22  ;;  %1177 = vmatmul.f32.vlgmr.msrb.gmra.mxu1 %v3766_v25 }
 0x106   : > { %1417 = vmatpush.xpose.msra.mxu2 %v1300_v12  ;;  %1440 = vmatpush.xpose.msra.mxu3 %v1301_v13  ;;  %v1244_v12 = vld [vmem:[%s3642_s14 + $0x10] sm:$0xff] }
 0x107   : > { %1371 = vmatpush.xpose.msra.mxu0 %v1298_v14  ;;  %1394 = vmatpush.xpose.msra.mxu1 %v1299_v15  ;;  %v1368_v13 = vld [vmem:[%s3642_s14 + $0x3f0] sm:$0xff]  ;;  %v1245_v14 = vld [vmem:[%s3642_s14 + $0x18] sm:$0xff] }
 0x108   : > { %v1369_v15 = vld [vmem:[%s3642_s14 + $0x3f8] sm:$0xff] }
 0x109   : > { %1203 = vmatmul.f32.gmra.mxu2 %v3772_v28  ;;  %1226 = vmatmul.f32.gmra.mxu3 %v3780_v33 }
 0x10a   : > { %1418 = vmatpush.xpose.msra.mxu2 %v1296_v17  ;;  %1441 = vmatpush.xpose.msra.mxu3 %v1297_v18  ;;  %v1242_v17 = vld [vmem:[%s3642_s14] sm:$0xff]  ;;  %v1243_v18 = vld [vmem:[%s3642_s14 + $0x8] sm:$0xff] }
 0x10b   : > { %1372 = vmatpush.xpose.msra.mxu0 %v1294_v19  ;;  %1395 = vmatpush.xpose.msra.mxu1 %v1295_v20  ;;  %v1366_v19 = vld [vmem:[%s3642_s14 + $0x3e0] sm:$0xff]  ;;  %v1367_v20 = vld [vmem:[%s3642_s14 + $0x3e8] sm:$0xff] }
 0x10c   : > { %1157 = vmatmul.f32.gmra.mxu0 %v3783_v34  ;;  %1180 = vmatmul.f32.gmra.mxu1 %v3790_v37 }
 0x10e   : > { %1419 = vmatpush.xpose.msra.mxu2 %v1292_v23  ;;  %1442 = vmatpush.xpose.msra.mxu3 %v1293_v24  ;;  %v1364_v23 = vld [vmem:[%s3642_s14 + $0x3d0] sm:$0xff]  ;;  %v1365_v24 = vld [vmem:[%s3642_s14 + $0x3d8] sm:$0xff] }
 0x10f   : > { %1373 = vmatpush.xpose.msra.mxu0 %v1290_v26  ;;  %1396 = vmatpush.xpose.msra.mxu1 %v1291_v27  ;;  %v1362_v26 = vld [vmem:[%s3642_s14 + $0x3c0] sm:$0xff]  ;;  %v1363_v27 = vld [vmem:[%s3642_s14 + $0x3c8] sm:$0xff] }
 0x112   : > { %1420 = vmatpush.xpose.msra.mxu2 %v1288_v29  ;;  %1443 = vmatpush.xpose.msra.mxu3 %v1289_v30  ;;  %v1360_v29 = vld [vmem:[%s3642_s14 + $0x3b0] sm:$0xff]  ;;  %v1361_v30 = vld [vmem:[%s3642_s14 + $0x3b8] sm:$0xff] }
 0x113   : > { %1374 = vmatpush.xpose.msra.mxu0 %v1286_v31  ;;  %1397 = vmatpush.xpose.msra.mxu1 %v1287_v32  ;;  %v1358_v31 = vld [vmem:[%s3642_s14 + $0x3a0] sm:$0xff]  ;;  %v1359_v32 = vld [vmem:[%s3642_s14 + $0x3a8] sm:$0xff] }
 0x116   : > { %1421 = vmatpush.xpose.msra.mxu2 %v1284_v35  ;;  %1444 = vmatpush.xpose.msra.mxu3 %v1285_v36  ;;  %v1356_v35 = vld [vmem:[%s3642_s14 + $0x390] sm:$0xff]  ;;  %v1357_v36 = vld [vmem:[%s3642_s14 + $0x398] sm:$0xff] }
 0x117   : > { %1375 = vmatpush.xpose.msra.mxu0 %v1282_v38  ;;  %1398 = vmatpush.xpose.msra.mxu1 %v1283_v39  ;;  %v1354_v38 = vld [vmem:[%s3642_s14 + $0x380] sm:$0xff]  ;;  %v1355_v39 = vld [vmem:[%s3642_s14 + $0x388] sm:$0xff] }
 0x11a   : > { %1422 = vmatpush.xpose.msra.mxu2 %v1280_v40  ;;  %1445 = vmatpush.xpose.msra.mxu3 %v1281_v41  ;;  %v1352_v40 = vld [vmem:[%s3642_s14 + $0x370] sm:$0xff]  ;;  %v1353_v41 = vld [vmem:[%s3642_s14 + $0x378] sm:$0xff] }
 0x11b   : > { %1376 = vmatpush.xpose.msra.mxu0 %v1278_v42  ;;  %1399 = vmatpush.xpose.msra.mxu1 %v1279_v43  ;;  %v1350_v42 = vld [vmem:[%s3642_s14 + $0x360] sm:$0xff]  ;;  %v1351_v43 = vld [vmem:[%s3642_s14 + $0x368] sm:$0xff] }
 0x11e   : > { %1423 = vmatpush.xpose.msra.mxu2 %v1276_v44  ;;  %1446 = vmatpush.xpose.msra.mxu3 %v1277_v45  ;;  %v1348_v44 = vld [vmem:[%s3642_s14 + $0x350] sm:$0xff]  ;;  %v1349_v45 = vld [vmem:[%s3642_s14 + $0x358] sm:$0xff] }
 0x11f   : > { %1377 = vmatpush.xpose.msra.mxu0 %v1274_v46  ;;  %1400 = vmatpush.xpose.msra.mxu1 %v1275_v47  ;;  %v1346_v46 = vld [vmem:[%s3642_s14 + $0x340] sm:$0xff]  ;;  %v1347_v47 = vld [vmem:[%s3642_s14 + $0x348] sm:$0xff] }
 0x122   : > { %1424 = vmatpush.xpose.msra.mxu2 %v1272_v48  ;;  %1447 = vmatpush.xpose.msra.mxu3 %v1273_v49  ;;  %v1344_v49 = vld [vmem:[%s3642_s14 + $0x330] sm:$0xff] }
 0x123   : > { %1378 = vmatpush.xpose.msra.mxu0 %v1270_v50  ;;  %1401 = vmatpush.xpose.msra.mxu1 %v1271_v51 }
 0x126   : > { %1425 = vmatpush.xpose.msra.mxu2 %v1268_v52  ;;  %1448 = vmatpush.xpose.msra.mxu3 %v1269_v53  ;;  %v1345_v52 = vld [vmem:[%s3642_s14 + $0x338] sm:$0xff] }
 0x127   : > { %1379 = vmatpush.xpose.msra.mxu0 %v1266_v54  ;;  %1402 = vmatpush.xpose.msra.mxu1 %v1267_v55  ;;  %v1342_v54 = vld [vmem:[%s3642_s14 + $0x320] sm:$0xff]  ;;  %v1343_v55 = vld [vmem:[%s3642_s14 + $0x328] sm:$0xff] }
 0x12a   : > { %1426 = vmatpush.xpose.msra.mxu2 %v1264_v56  ;;  %1449 = vmatpush.xpose.msra.mxu3 %v1265_v57  ;;  %v3937_v57 = vld [vmem:[%s719_s4] sm:$0x3]  ;;  %s759_s4 = scalar_lea.vmem [#allocation19], %s3651_s0  ;;  %s2578_s0 = sshll.u32 %s4605_s2, 3 }
 0x12b   : > { %1380 = vmatpush.xpose.msra.mxu0 %v1262_v58  ;;  %1403 = vmatpush.xpose.msra.mxu1 %v1263_v59  ;;  %v1340_v58 = vld [vmem:[%s3642_s14 + $0x310] sm:$0xff] }
 0x12e   : > { %1427 = vmatpush.xpose.msra.mxu2 %v1260_v60  ;;  %1450 = vmatpush.xpose.msra.mxu3 %v1261_v61  ;;  %v1895_v60 = vperm.slane %v3937_v57, 0  ;;  %v1341_v61 = vld [vmem:[%s3642_s14 + $0x318] sm:$0xff] }
 0x12f   : > { %1381 = vmatpush.xpose.msra.mxu0 %v1258_v62  ;;  %1404 = vmatpush.xpose.msra.mxu1 %v1259_v63  ;;  %v1338_v63 = vld [vmem:[%s3642_s14 + $0x300] sm:$0xff] }
 0x132   : > { %1428 = vmatpush.xpose.msra.mxu2 %v1256_v0  ;;  %1451 = vmatpush.xpose.msra.mxu3 %v1257_v1  ;;  %v1339_v0 = vld [vmem:[%s3642_s14 + $0x308] sm:$0xff] }
 0x133   : > { %1382 = vmatpush.xpose.msra.mxu0 %v1254_v2  ;;  %1405 = vmatpush.xpose.msra.mxu1 %v1255_v3  ;;  %v1336_v2 = vld [vmem:[%s3642_s14 + $0x2f0] sm:$0xff] }
 0x136   : > { %1429 = vmatpush.xpose.msra.mxu2 %v1252_v4  ;;  %1452 = vmatpush.xpose.msra.mxu3 %v1253_v5  ;;  %v1337_v5 = vld [vmem:[%s3642_s14 + $0x2f8] sm:$0xff] }
 0x137   : > { %1383 = vmatpush.xpose.msra.mxu0 %v1250_v6  ;;  %1406 = vmatpush.xpose.msra.mxu1 %v1251_v7 }
 0x13a   : > { %1430 = vmatpush.xpose.msra.mxu2 %v1248_v8  ;;  %1453 = vmatpush.xpose.msra.mxu3 %v1249_v9  ;;  %v1334_v8 = vld [vmem:[%s3642_s14 + $0x2e0] sm:$0xff]  ;;  %v1335_v9 = vld [vmem:[%s3642_s14 + $0x2e8] sm:$0xff] }
 0x13b   : > { %1384 = vmatpush.xpose.msra.mxu0 %v1246_v10  ;;  %1407 = vmatpush.xpose.msra.mxu1 %v1247_v11  ;;  %v1332_v11 = vld [vmem:[%s3642_s14 + $0x2d0] sm:$0xff] }
 0x13e   : > { %1431 = vmatpush.xpose.msra.mxu2 %v1244_v12  ;;  %1454 = vmatpush.xpose.msra.mxu3 %v1245_v14 }
 0x13f   : > { %1385 = vmatpush.xpose.msra.mxu0 %v1242_v17  ;;  %1408 = vmatpush.xpose.msra.mxu1 %v1243_v18  ;;  %v1331_v17 = vld [vmem:[%s3642_s14 + $0x2c8] sm:$0xff] }
 0x141   : > { %1432 = vmatmul.f32.vlgmr.msra.gmra.mxu2 %v3748_v16  ;;  %1455 = vmatmul.f32.vlgmr.msra.gmra.mxu3 %v3756_v21  ;;  %v1063_v48 = vpop.f32.mrf.mxu0  ;;  %v1086_v50 = vpop.f32.mrf.mxu1 }
 0x142   : > { %1508 = vmatpush.xpose.msrb.mxu2 %v1368_v13  ;;  %1531 = vmatpush.xpose.msrb.mxu3 %v1369_v15  ;;  %v1087_v53 = vadd.f32 %v1086_v50, %v1063_v48  ;;  %v1333_v13 = vld [vmem:[%s3642_s14 + $0x2d8] sm:$0xff]  ;;  %v1330_v15 = vld [vmem:[%s3642_s14 + $0x2c0] sm:$0xff]  ;;  %v1628_v48 = vld [vmem:[%s3645_s27 + $0x1f0] sm:$0xff] }
 0x143   : > { %1462 = vmatpush.xpose.msrb.mxu0 %v1366_v19  ;;  %1485 = vmatpush.xpose.msrb.mxu1 %v1367_v20  ;;  %v1328_v19 = vld [vmem:[%s3642_s14 + $0x2b0] sm:$0xff]  ;;  %v1329_v20 = vld [vmem:[%s3642_s14 + $0x2b8] sm:$0xff]  ;;  %v1306_v50 = vld [vmem:[%s3642_s14 + $0x200] sm:$0xff] }
 0x144   : > { %1386 = vmatmul.f32.vlgmr.msra.gmra.mxu0 %v3759_v22  ;;  %1409 = vmatmul.f32.vlgmr.msra.gmra.mxu1 %v3766_v25  ;;  %v1109_v51 = vpop.f32.mrf.mxu2  ;;  %v1132_v59 = vpop.f32.mrf.mxu3 }
 0x145   : > { %v1110_v56 = vadd.f32 %v1109_v51, %v1087_v53  ;;  %v1307_v51 = vld [vmem:[%s3642_s14 + $0x208] sm:$0xff] }
 0x146   : > { %1509 = vmatpush.xpose.msrb.mxu2 %v1364_v23  ;;  %1532 = vmatpush.xpose.msrb.mxu3 %v1365_v24  ;;  %v1326_v23 = vld [vmem:[%s3642_s14 + $0x2a0] sm:$0xff]  ;;  %v1327_v24 = vld [vmem:[%s3642_s14 + $0x2a8] sm:$0xff] }
 0x147   : > { %1463 = vmatpush.xpose.msrb.mxu0 %v1362_v26  ;;  %1486 = vmatpush.xpose.msrb.mxu1 %v1363_v27  ;;  %v1133_v62 = vadd.f32 %v1132_v59, %v1110_v56  ;;  %v1324_v26 = vld [vmem:[%s3642_s14 + $0x290] sm:$0xff]  ;;  %v1325_v27 = vld [vmem:[%s3642_s14 + $0x298] sm:$0xff]  ;;  %v1627_v53 = vld [vmem:[%s3645_s27 + $0x1e8] sm:$0xff] }
 0x148   : > { %v1622_v56 = vld [vmem:[%s3645_s27 + $0x1c0] sm:$0xff]  ;;  %v1620_v59 = vld [vmem:[%s3645_s27 + $0x1b0] sm:$0xff] }
 0x149   : > { %1435 = vmatmul.f32.gmra.mxu2 %v3772_v28  ;;  %1458 = vmatmul.f32.gmra.mxu3 %v3780_v33  ;;  %v3944_v1 = vadd.f32 %v1895_v60, %v1133_v62  ;;  %v1066_v3 = vpop.f32.mrf.mxu0  ;;  %v1089_v4 = vpop.f32.mrf.mxu1  ;;  %v1618_v62 = vld [vmem:[%s3645_s27 + $0x1a0] sm:$0xff] }
 0x14a   : > { %1510 = vmatpush.xpose.msrb.mxu2 %v1360_v29  ;;  %1533 = vmatpush.xpose.msrb.mxu3 %v1361_v30  ;;  %v1090_v6 = vadd.f32 %v1089_v4, %v1066_v3  ;;  %v1322_v29 = vld [vmem:[%s3642_s14 + $0x280] sm:$0xff]  ;;  %v1323_v30 = vld [vmem:[%s3642_s14 + $0x288] sm:$0xff]  ;;  %v1896_v3 = vperm.slane %v3937_v57, 1  ;;  %v1617_v4 = vld [vmem:[%s3645_s27 + $0x198] sm:$0xff] }
 0x14b   : > { %1464 = vmatpush.xpose.msrb.mxu0 %v1358_v31  ;;  %1487 = vmatpush.xpose.msrb.mxu1 %v1359_v32  ;;  %v1320_v31 = vld [vmem:[%s3642_s14 + $0x270] sm:$0xff]  ;;  %v1321_v32 = vld [vmem:[%s3642_s14 + $0x278] sm:$0xff] }
 0x14c   : > { %1389 = vmatmul.f32.gmra.mxu0 %v3783_v34  ;;  %1412 = vmatmul.f32.gmra.mxu1 %v3790_v37  ;;  %v1112_v7 = vpop.f32.mrf.mxu2  ;;  %v1135_v12 = vpop.f32.mrf.mxu3  ;;  %v1613_v57 = vld [vmem:[%s3645_s27 + $0x178] sm:$0xff] }
 0x14d   : > { %1975 = vrot.lane.b32.xlu0 %v3944_v1, %s3268_s7  ;;  %1962 = vrot.lane.b32.xlu2 %v3944_v1, %s3269_s16  ;;  %v1113_v10 = vadd.f32 %v1112_v7, %v1090_v6  ;;  %v1615_v6 = vld [vmem:[%s3645_s27 + $0x188] sm:$0xff]  ;;  %v1612_v7 = vld [vmem:[%s3645_s27 + $0x170] sm:$0xff] }
 0x14e   : > { %1511 = vmatpush.xpose.msrb.mxu2 %v1356_v35  ;;  %1534 = vmatpush.xpose.msrb.mxu3 %v1357_v36  ;;  %v1318_v35 = vld [vmem:[%s3642_s14 + $0x260] sm:$0xff]  ;;  %v1319_v36 = vld [vmem:[%s3642_s14 + $0x268] sm:$0xff] }
 0x14f   : > { %1465 = vmatpush.xpose.msrb.mxu0 %v1354_v38  ;;  %1488 = vmatpush.xpose.msrb.mxu1 %v1355_v39  ;;  %v1136_v14 = vadd.f32 %v1135_v12, %v1113_v10  ;;  %v1316_v38 = vld [vmem:[%s3642_s14 + $0x250] sm:$0xff]  ;;  %v1317_v39 = vld [vmem:[%s3642_s14 + $0x258] sm:$0xff]  ;;  %v1610_v10 = vld [vmem:[%s3645_s27 + $0x160] sm:$0xff] }
 0x151   : > { %v3958_v18 = vadd.f32 %v1895_v60, %v1136_v14  ;;  %v1609_v14 = vld [vmem:[%s3645_s27 + $0x158] sm:$0xff] }
 0x152   : > { %1512 = vmatpush.xpose.msrb.mxu2 %v1352_v40  ;;  %1535 = vmatpush.xpose.msrb.mxu3 %v1353_v41  ;;  %v1314_v40 = vld [vmem:[%s3642_s14 + $0x240] sm:$0xff]  ;;  %v1315_v41 = vld [vmem:[%s3642_s14 + $0x248] sm:$0xff] }
 0x153   : > { %1466 = vmatpush.xpose.msrb.mxu0 %v1350_v42  ;;  %1489 = vmatpush.xpose.msrb.mxu1 %v1351_v43  ;;  %v1312_v42 = vld [vmem:[%s3642_s14 + $0x230] sm:$0xff]  ;;  %v1313_v43 = vld [vmem:[%s3642_s14 + $0x238] sm:$0xff] }
 0x155   : > { %1964 = vrot.lane.b32.xlu0 %v3958_v18, %s3269_s16 }
 0x156   : > { %1513 = vmatpush.xpose.msrb.mxu2 %v1348_v44  ;;  %1536 = vmatpush.xpose.msrb.mxu3 %v1349_v45  ;;  %v1310_v44 = vld [vmem:[%s3642_s14 + $0x220] sm:$0xff]  ;;  %v1311_v45 = vld [vmem:[%s3642_s14 + $0x228] sm:$0xff] }
 0x157   : > { %1467 = vmatpush.xpose.msrb.mxu0 %v1346_v46  ;;  %1490 = vmatpush.xpose.msrb.mxu1 %v1347_v47  ;;  %v1308_v46 = vld [vmem:[%s3642_s14 + $0x210] sm:$0xff]  ;;  %v1309_v47 = vld [vmem:[%s3642_s14 + $0x218] sm:$0xff] }
 0x15a   : > { %1514 = vmatpush.xpose.msrb.mxu2 %v1344_v49  ;;  %1537 = vmatpush.xpose.msrb.mxu3 %v1345_v52  ;;  %v1629_v49 = vld [vmem:[%s3645_s27 + $0x1f8] sm:$0xff]  ;;  %v1626_v52 = vld [vmem:[%s3645_s27 + $0x1e0] sm:$0xff] }
 0x15b   : > { %1468 = vmatpush.xpose.msrb.mxu0 %v1342_v54  ;;  %1491 = vmatpush.xpose.msrb.mxu1 %v1343_v55  ;;  %v1624_v54 = vld [vmem:[%s3645_s27 + $0x1d0] sm:$0xff]  ;;  %v1625_v55 = vld [vmem:[%s3645_s27 + $0x1d8] sm:$0xff] }
 0x15e   : > { %1515 = vmatpush.xpose.msrb.mxu2 %v1340_v58  ;;  %1538 = vmatpush.xpose.msrb.mxu3 %v1341_v61  ;;  %v1623_v58 = vld [vmem:[%s3645_s27 + $0x1c8] sm:$0xff]  ;;  %v1621_v61 = vld [vmem:[%s3645_s27 + $0x1b8] sm:$0xff] }
 0x15f   : > { %1469 = vmatpush.xpose.msrb.mxu0 %v1338_v63  ;;  %1492 = vmatpush.xpose.msrb.mxu1 %v1339_v0  ;;  %v1619_v63 = vld [vmem:[%s3645_s27 + $0x1a8] sm:$0xff] }
 0x162   : > { %1516 = vmatpush.xpose.msrb.mxu2 %v1336_v2  ;;  %1539 = vmatpush.xpose.msrb.mxu3 %v1337_v5 }
 0x163   : > { %1470 = vmatpush.xpose.msrb.mxu0 %v1334_v8  ;;  %1493 = vmatpush.xpose.msrb.mxu1 %v1335_v9 }
 0x166   : > { %1517 = vmatpush.xpose.msrb.mxu2 %v1332_v11  ;;  %1540 = vmatpush.xpose.msrb.mxu3 %v1333_v13  ;;  %v1608_v11 = vld [vmem:[%s3645_s27 + $0x150] sm:$0xff] }
 0x167   : > { %1471 = vmatpush.xpose.msrb.mxu0 %v1330_v15  ;;  %1494 = vmatpush.xpose.msrb.mxu1 %v1331_v17  ;;  %v1606_v17 = vld [vmem:[%s3645_s27 + $0x140] sm:$0xff] }
 0x16a   : > { %1518 = vmatpush.xpose.msrb.mxu2 %v1328_v19  ;;  %1541 = vmatpush.xpose.msrb.mxu3 %v1329_v20  ;;  %v1607_v19 = vld [vmem:[%s3645_s27 + $0x148] sm:$0xff] }
 0x16b   : > { %1472 = vmatpush.xpose.msrb.mxu0 %v1326_v23  ;;  %1495 = vmatpush.xpose.msrb.mxu1 %v1327_v24  ;;  %v1604_v23 = vld [vmem:[%s3645_s27 + $0x130] sm:$0xff]  ;;  %v1605_v24 = vld [vmem:[%s3645_s27 + $0x138] sm:$0xff] }
 0x16e   : > { %1519 = vmatpush.xpose.msrb.mxu2 %v1324_v26  ;;  %1542 = vmatpush.xpose.msrb.mxu3 %v1325_v27  ;;  %v1602_v27 = vld [vmem:[%s3645_s27 + $0x120] sm:$0xff] }
 0x16f   : > { %1473 = vmatpush.xpose.msrb.mxu0 %v1322_v29  ;;  %1496 = vmatpush.xpose.msrb.mxu1 %v1323_v30  ;;  %v1603_v29 = vld [vmem:[%s3645_s27 + $0x128] sm:$0xff]  ;;  %v1600_v30 = vld [vmem:[%s3645_s27 + $0x110] sm:$0xff] }
 0x172   : > { %1520 = vmatpush.xpose.msrb.mxu2 %v1320_v31  ;;  %1543 = vmatpush.xpose.msrb.mxu3 %v1321_v32  ;;  %v1601_v31 = vld [vmem:[%s3645_s27 + $0x118] sm:$0xff]  ;;  %v1598_v32 = vld [vmem:[%s3645_s27 + $0x100] sm:$0xff] }
 0x173   : > { %1474 = vmatpush.xpose.msrb.mxu0 %v1318_v35  ;;  %1497 = vmatpush.xpose.msrb.mxu1 %v1319_v36  ;;  %v1599_v35 = vld [vmem:[%s3645_s27 + $0x108] sm:$0xff]  ;;  %v1596_v36 = vld [vmem:[%s3645_s27 + $0xf0] sm:$0xff] }
 0x176   : > { %1521 = vmatpush.xpose.msrb.mxu2 %v1316_v38  ;;  %1544 = vmatpush.xpose.msrb.mxu3 %v1317_v39  ;;  %v1597_v38 = vld [vmem:[%s3645_s27 + $0xf8] sm:$0xff]  ;;  %v1594_v39 = vld [vmem:[%s3645_s27 + $0xe0] sm:$0xff] }
 0x177   : > { %1475 = vmatpush.xpose.msrb.mxu0 %v1314_v40  ;;  %1498 = vmatpush.xpose.msrb.mxu1 %v1315_v41  ;;  %v1595_v40 = vld [vmem:[%s3645_s27 + $0xe8] sm:$0xff]  ;;  %v1592_v41 = vld [vmem:[%s3645_s27 + $0xd0] sm:$0xff] }
 0x17a   : > { %1522 = vmatpush.xpose.msrb.mxu2 %v1312_v42  ;;  %1545 = vmatpush.xpose.msrb.mxu3 %v1313_v43  ;;  %v1593_v42 = vld [vmem:[%s3645_s27 + $0xd8] sm:$0xff]  ;;  %v1590_v43 = vld [vmem:[%s3645_s27 + $0xc0] sm:$0xff] }
 0x17b   : > { %1476 = vmatpush.xpose.msrb.mxu0 %v1310_v44  ;;  %1499 = vmatpush.xpose.msrb.mxu1 %v1311_v45  ;;  %v1591_v44 = vld [vmem:[%s3645_s27 + $0xc8] sm:$0xff]  ;;  %v1588_v45 = vld [vmem:[%s3645_s27 + $0xb0] sm:$0xff] }
 0x17e   : > { %1523 = vmatpush.xpose.msrb.mxu2 %v1308_v46  ;;  %1546 = vmatpush.xpose.msrb.mxu3 %v1309_v47  ;;  %v1589_v46 = vld [vmem:[%s3645_s27 + $0xb8] sm:$0xff]  ;;  %v1586_v47 = vld [vmem:[%s3645_s27 + $0xa0] sm:$0xff] }
 0x17f   : > { %1477 = vmatpush.xpose.msrb.mxu0 %v1306_v50  ;;  %1500 = vmatpush.xpose.msrb.mxu1 %v1307_v51  ;;  %v1585_v50 = vld [vmem:[%s3645_s27 + $0x98] sm:$0xff]  ;;  %v1582_v51 = vld [vmem:[%s3645_s27 + $0x80] sm:$0xff] }
 0x181   : > { %1524 = vmatmul.f32.vlgmr.msrb.gmra.mxu2 %v3748_v16  ;;  %1547 = vmatmul.f32.vlgmr.msrb.gmra.mxu3 %v3756_v21  ;;  %v1155_v16 = vpop.f32.mrf.mxu0  ;;  %v1178_v60 = vpop.f32.mrf.mxu1 }
 0x182   : > { %1740 = vmatpush.xpose.msra.mxu2 %v1628_v48  ;;  %1763 = vmatpush.xpose.msra.mxu3 %v1629_v49  ;;  %v1179_v21 = vadd.f32 %v1178_v60, %v1155_v16  ;;  %v1587_v48 = vld [vmem:[%s3645_s27 + $0xa8] sm:$0xff]  ;;  %v1584_v49 = vld [vmem:[%s3645_s27 + $0x90] sm:$0xff]  ;;  %v1577_v16 = vld [vmem:[%s3645_s27 + $0x58] sm:$0xff] }
 0x183   : > { %1694 = vmatpush.xpose.msra.mxu0 %v1626_v52  ;;  %1717 = vmatpush.xpose.msra.mxu1 %v1627_v53  ;;  %v1583_v52 = vld [vmem:[%s3645_s27 + $0x88] sm:$0xff]  ;;  %v1580_v53 = vld [vmem:[%s3645_s27 + $0x70] sm:$0xff] }
 0x184   : > { %1478 = vmatmul.f32.vlgmr.msrb.gmra.mxu0 %v3759_v22  ;;  %1501 = vmatmul.f32.vlgmr.msrb.gmra.mxu1 %v3766_v25  ;;  %v1201_v22 = vpop.f32.mrf.mxu2  ;;  %v1224_v0 = vpop.f32.mrf.mxu3  ;;  %v1616_v25 = vld [vmem:[%s3645_s27 + $0x190] sm:$0xff]  ;;  %v1575_v60 = vld [vmem:[%s3645_s27 + $0x48] sm:$0xff] }
 0x185   : > { %v1202_v2 = vadd.f32 %v1201_v22, %v1179_v21  ;;  %v1573_v21 = vld [vmem:[%s3645_s27 + $0x38] sm:$0xff]  ;;  %v1568_v22 = vld [vmem:[%s3645_s27 + $0x10] sm:$0xff] }
 0x186   : > { %1741 = vmatpush.xpose.msra.mxu2 %v1624_v54  ;;  %1764 = vmatpush.xpose.msra.mxu3 %v1625_v55  ;;  %v1581_v54 = vld [vmem:[%s3645_s27 + $0x78] sm:$0xff]  ;;  %v1578_v55 = vld [vmem:[%s3645_s27 + $0x60] sm:$0xff] }
 0x187   : > { %1695 = vmatpush.xpose.msra.mxu0 %v1622_v56  ;;  %1718 = vmatpush.xpose.msra.mxu1 %v1623_v58  ;;  %v1225_v5 = vadd.f32 %v1224_v0, %v1202_v2  ;;  %v1579_v56 = vld [vmem:[%s3645_s27 + $0x68] sm:$0xff]  ;;  %v1576_v58 = vld [vmem:[%s3645_s27 + $0x50] sm:$0xff]  ;;  %v1693_v2 = vld [vmem:[%s3645_s27 + $0x3f8] sm:$0xff] }
 0x188   : > { %v1692_v0 = vld [vmem:[%s3645_s27 + $0x3f0] sm:$0xff] }
 0x189   : > { %1527 = vmatmul.f32.gmra.mxu2 %v3772_v28  ;;  %1550 = vmatmul.f32.gmra.mxu3 %v3780_v33  ;;  %v1614_v28 = vld [vmem:[%s3645_s27 + $0x180] sm:$0xff]  ;;  %v1158_v33 = vpop.f32.mrf.mxu0  ;;  %v4012_v8 = vadd.f32 %v1896_v3, %v1225_v5  ;;  %v1181_v9 = vpop.f32.mrf.mxu1 }
 0x18a   : > { %1742 = vmatpush.xpose.msra.mxu2 %v1620_v59  ;;  %1765 = vmatpush.xpose.msra.mxu3 %v1621_v61  ;;  %v1574_v59 = vld [vmem:[%s3645_s27 + $0x40] sm:$0xff]  ;;  %v1572_v61 = vld [vmem:[%s3645_s27 + $0x30] sm:$0xff] }
 0x18b   : > { %1696 = vmatpush.xpose.msra.mxu0 %v1618_v62  ;;  %1719 = vmatpush.xpose.msra.mxu1 %v1619_v63  ;;  %v1570_v62 = vld [vmem:[%s3645_s27 + $0x20] sm:$0xff]  ;;  %v1571_v63 = vld [vmem:[%s3645_s27 + $0x28] sm:$0xff] }
 0x18c   : > { %1481 = vmatmul.f32.gmra.mxu0 %v3783_v34  ;;  %1504 = vmatmul.f32.gmra.mxu1 %v3790_v37  ;;  %v1182_v34 = vadd.f32 %v1181_v9, %v1158_v33  ;;  %v1611_v37 = vld [vmem:[%s3645_s27 + $0x168] sm:$0xff]  ;;  %v1204_v12 = vpop.f32.mrf.mxu2  ;;  %v1227_v13 = vpop.f32.mrf.mxu3  ;;  %v1690_v5 = vld [vmem:[%s3645_s27 + $0x3e0] sm:$0xff]  ;;  %v4087_v9 = vld [vmem:[%s3625_s25 + $0x18] sm:$0xff] }
 0x18d   : > { %1966 = vrot.lane.b32.xlu1 %v4012_v8, %s3269_s16  ;;  %v1686_v33 = vld [vmem:[%s3645_s27 + $0x3c0] sm:$0xff] }
 0x18e   : > { %1743 = vmatpush.xpose.msra.mxu2 %v1616_v25  ;;  %1766 = vmatpush.xpose.msra.mxu3 %v1617_v4  ;;  %v1205_v15 = vadd.f32 %v1204_v12, %v1182_v34  ;;  %v1569_v25 = vld [vmem:[%s3645_s27 + $0x18] sm:$0xff]  ;;  %v1567_v4 = vld [vmem:[%s3645_s27 + $0x8] sm:$0xff]  ;;  %v1684_v34 = vld [vmem:[%s3645_s27 + $0x3b0] sm:$0xff] }
 0x18f   : > { %1697 = vmatpush.xpose.msra.mxu0 %v1614_v28  ;;  %1720 = vmatpush.xpose.msra.mxu1 %v1615_v6  ;;  %v1691_v28 = vld [vmem:[%s3645_s27 + $0x3e8] sm:$0xff]  ;;  %v1688_v6 = vld [vmem:[%s3645_s27 + $0x3d0] sm:$0xff]  ;;  %v4101_v12 = vld [vmem:[%s3625_s25] sm:$0xff] }
 0x190   : > { %v1228_v20 = vadd.f32 %v1227_v13, %v1205_v15  ;;  %v4105_v13 = vld [vmem:[%s3625_s25 + $0x8] sm:$0xff]  ;;  %v4108_v15 = vld [vmem:[%s873_s22] sm:$0x3] }
 0x192   : > { %1744 = vmatpush.xpose.msra.mxu2 %v1612_v7  ;;  %1767 = vmatpush.xpose.msra.mxu3 %v1613_v57  ;;  %v4025_v26 = vadd.f32 %v1896_v3, %v1228_v20  ;;  %v1566_v3 = vld [vmem:[%s3645_s27] sm:$0xff]  ;;  %v1689_v7 = vld [vmem:[%s3645_s27 + $0x3d8] sm:$0xff]  ;;  %v1687_v57 = vld [vmem:[%s3645_s27 + $0x3c8] sm:$0xff] }
 0x193   : > { %1698 = vmatpush.xpose.msra.mxu0 %v1610_v10  ;;  %1721 = vmatpush.xpose.msra.mxu1 %v1611_v37  ;;  %v4092_v10 = vld [vmem:[%s3625_s25 + $0x10] sm:$0xff]  ;;  %v1683_v20 = vld [vmem:[%s3645_s27 + $0x3a8] sm:$0xff] }
 0x194   : > { %1968 = vrot.lane.b32.xlu2 %v4025_v26, %s3269_s16 }
 0x196   : > { %1745 = vmatpush.xpose.msra.mxu2 %v1608_v11  ;;  %1768 = vmatpush.xpose.msra.mxu3 %v1609_v14  ;;  %v1685_v11 = vld [vmem:[%s3645_s27 + $0x3b8] sm:$0xff] }
 0x197   : > { %1699 = vmatpush.xpose.msra.mxu0 %v1606_v17  ;;  %1722 = vmatpush.xpose.msra.mxu1 %v1607_v19  ;;  %v1682_v19 = vld [vmem:[%s3645_s27 + $0x3a0] sm:$0xff] }
 0x19a   : > { %1746 = vmatpush.xpose.msra.mxu2 %v1604_v23  ;;  %1769 = vmatpush.xpose.msra.mxu3 %v1605_v24  ;;  %v4112_v24 = vld [vmem:[%s881_s17] sm:$0x3]  ;;  %s4609_s17 = sld [smem:[#allocation56_spill]] }
 0x19b   : > { %1700 = vmatpush.xpose.msra.mxu0 %v1602_v27  ;;  %1723 = vmatpush.xpose.msra.mxu1 %v1603_v29  ;;  %v1680_v27 = vld [vmem:[%s3645_s27 + $0x390] sm:$0xff] }
 0x19e   : > { %1747 = vmatpush.xpose.msra.mxu2 %v1600_v30  ;;  %1770 = vmatpush.xpose.msra.mxu3 %v1601_v31  ;;  %v1909_v31 = vperm.slane %v4108_v15, 0 }
 0x19f   : > { %1701 = vmatpush.xpose.msra.mxu0 %v1598_v32  ;;  %1724 = vmatpush.xpose.msra.mxu1 %v1599_v35  ;;  %v1681_v32 = vld [vmem:[%s3645_s27 + $0x398] sm:$0xff] }
 0x1a2   : > { %1748 = vmatpush.xpose.msra.mxu2 %v1596_v36  ;;  %1771 = vmatpush.xpose.msra.mxu3 %v1597_v38  ;;  %v2049_v36 = vperm.slane %v4112_v24, 0  ;;  %v1678_v38 = vld [vmem:[%s3645_s27 + $0x380] sm:$0xff] }
 0x1a3   : > { %1702 = vmatpush.xpose.msra.mxu0 %v1594_v39  ;;  %1725 = vmatpush.xpose.msra.mxu1 %v1595_v40  ;;  %v1679_v39 = vld [vmem:[%s3645_s27 + $0x388] sm:$0xff]  ;;  %v4121_v40 = vld [vmem:[%s3625_s25 + $0x38] sm:$0xff] }
 0x1a6   : > { %1749 = vmatpush.xpose.msra.mxu2 %v1592_v41  ;;  %1772 = vmatpush.xpose.msra.mxu3 %v1593_v42  ;;  %v1676_v41 = vld [vmem:[%s3645_s27 + $0x370] sm:$0xff] }
 0x1a7   : > { %1703 = vmatpush.xpose.msra.mxu0 %v1590_v43  ;;  %1726 = vmatpush.xpose.msra.mxu1 %v1591_v44  ;;  %v4126_v42 = vld [vmem:[%s3625_s25 + $0x30] sm:$0xff] }
 0x1aa   : > { %1750 = vmatpush.xpose.msra.mxu2 %v1588_v45  ;;  %1773 = vmatpush.xpose.msra.mxu3 %v1589_v46  ;;  %v1677_v45 = vld [vmem:[%s3645_s27 + $0x378] sm:$0xff]  ;;  %v4131_v46 = vld [vmem:[%s3625_s25 + $0x20] sm:$0xff] }
 0x1ab   : > { %1704 = vmatpush.xpose.msra.mxu0 %v1586_v47  ;;  %1727 = vmatpush.xpose.msra.mxu1 %v1587_v48  ;;  %v4135_v47 = vld [vmem:[%s3625_s25 + $0x28] sm:$0xff]  ;;  %s4600_s25 = sld [smem:[#allocation32_spill]] }
 0x1ae   : > { %1751 = vmatpush.xpose.msra.mxu2 %v1584_v49  ;;  %1774 = vmatpush.xpose.msra.mxu3 %v1585_v50 }
 0x1af   : > { %1705 = vmatpush.xpose.msra.mxu0 %v1582_v51  ;;  %1728 = vmatpush.xpose.msra.mxu1 %v1583_v52  ;;  %v1674_v51 = vld [vmem:[%s3645_s27 + $0x360] sm:$0xff]  ;;  %v1675_v52 = vld [vmem:[%s3645_s27 + $0x368] sm:$0xff] }
 0x1b1   : > { %s844_s1 = sand.u32 1, %s4600_s25  }
 0x1b2   : > { %1752 = vmatpush.xpose.msra.mxu2 %v1580_v53  ;;  %1775 = vmatpush.xpose.msra.mxu3 %v1581_v54  ;;  %v1672_v54 = vld [vmem:[%s3645_s27 + $0x350] sm:$0xff]  ;;  %s4255_s14 = sshll.u32 %s844_s1, 5 }
 0x1b3   : > { %1706 = vmatpush.xpose.msra.mxu0 %v1578_v55  ;;  %1729 = vmatpush.xpose.msra.mxu1 %v1579_v56  ;;  %s4276_s9 = scalar_lea.vmem [#allocation20], %s4255_s14 }
 0x1b6   : > { %1753 = vmatpush.xpose.msra.mxu2 %v1576_v58  ;;  %1776 = vmatpush.xpose.msra.mxu3 %v1577_v16  ;;  %v1673_v58 = vld [vmem:[%s3645_s27 + $0x358] sm:$0xff] }
 0x1b7   : > { %1707 = vmatpush.xpose.msra.mxu0 %v1574_v59  ;;  %1730 = vmatpush.xpose.msra.mxu1 %v1575_v60  ;;  %v1670_v59 = vld [vmem:[%s3645_s27 + $0x340] sm:$0xff]  ;;  %v1671_v60 = vld [vmem:[%s3645_s27 + $0x348] sm:$0xff] }
 0x1ba   : > { %1754 = vmatpush.xpose.msra.mxu2 %v1572_v61  ;;  %1777 = vmatpush.xpose.msra.mxu3 %v1573_v21  ;;  %v1668_v61 = vld [vmem:[%s3645_s27 + $0x330] sm:$0xff] }
 0x1bb   : > { %1708 = vmatpush.xpose.msra.mxu0 %v1570_v62  ;;  %1731 = vmatpush.xpose.msra.mxu1 %v1571_v63  ;;  %v1669_v62 = vld [vmem:[%s3645_s27 + $0x338] sm:$0xff] }
 0x1be   : > { %1755 = vmatpush.xpose.msra.mxu2 %v1568_v22  ;;  %1778 = vmatpush.xpose.msra.mxu3 %v1569_v25  ;;  %v1666_v22 = vld [vmem:[%s3645_s27 + $0x320] sm:$0xff]  ;;  %v1664_v25 = vld [vmem:[%s3645_s27 + $0x310] sm:$0xff] }
 0x1bf   : > { %1709 = vmatpush.xpose.msra.mxu0 %v1566_v3  ;;  %1732 = vmatpush.xpose.msra.mxu1 %v1567_v4  ;;  %v1662_v3 = vld [vmem:[%s3645_s27 + $0x300] sm:$0xff]  ;;  %v1663_v4 = vld [vmem:[%s3645_s27 + $0x308] sm:$0xff] }
 0x1c1   : > { %1779 = vmatmul.f32.vlgmr.msra.gmra.mxu3 %v4087_v9  ;;  %1756 = vmatmul.f32.vlgmr.msra.gmra.mxu2 %v4092_v10  ;;  %v1387_v37 = vpop.f32.mrf.mxu0  ;;  %v1410_v14 = vpop.f32.mrf.mxu1 }
 0x1c2   : > { %1832 = vmatpush.xpose.msrb.mxu2 %v1692_v0  ;;  %1855 = vmatpush.xpose.msrb.mxu3 %v1693_v2  ;;  %v1411_v17 = vadd.f32 %v1410_v14, %v1387_v37  ;;  %v1667_v0 = vld [vmem:[%s3645_s27 + $0x328] sm:$0xff]  ;;  %v1665_v2 = vld [vmem:[%s3645_s27 + $0x318] sm:$0xff] }
 0x1c3   : > { %1786 = vmatpush.xpose.msrb.mxu0 %v1690_v5  ;;  %1809 = vmatpush.xpose.msrb.mxu1 %v1691_v28  ;;  %v1660_v5 = vld [vmem:[%s3645_s27 + $0x2f0] sm:$0xff]  ;;  %v1661_v28 = vld [vmem:[%s3645_s27 + $0x2f8] sm:$0xff]  ;;  %v1655_v37 = vld [vmem:[%s3645_s27 + $0x2c8] sm:$0xff] }
 0x1c4   : > { %1710 = vmatmul.f32.vlgmr.msra.gmra.mxu0 %v4101_v12  ;;  %1733 = vmatmul.f32.vlgmr.msra.gmra.mxu1 %v4105_v13  ;;  %v1433_v23 = vpop.f32.mrf.mxu2  ;;  %v1456_v30 = vpop.f32.mrf.mxu3  ;;  %v1653_v14 = vld [vmem:[%s3645_s27 + $0x2b8] sm:$0xff] }
 0x1c5   : > { %v1434_v29 = vadd.f32 %v1433_v23, %v1411_v17  ;;  %v1650_v17 = vld [vmem:[%s3645_s27 + $0x2a0] sm:$0xff]  ;;  %v1649_v23 = vld [vmem:[%s3645_s27 + $0x298] sm:$0xff] }
 0x1c6   : > { %1833 = vmatpush.xpose.msrb.mxu2 %v1688_v6  ;;  %1856 = vmatpush.xpose.msrb.mxu3 %v1689_v7  ;;  %v1658_v6 = vld [vmem:[%s3645_s27 + $0x2e0] sm:$0xff]  ;;  %v1659_v7 = vld [vmem:[%s3645_s27 + $0x2e8] sm:$0xff] }
 0x1c7   : > { %1787 = vmatpush.xpose.msrb.mxu0 %v1686_v33  ;;  %1810 = vmatpush.xpose.msrb.mxu1 %v1687_v57  ;;  %v1457_v35 = vadd.f32 %v1456_v30, %v1434_v29  ;;  %v1656_v33 = vld [vmem:[%s3645_s27 + $0x2d0] sm:$0xff]  ;;  %v1657_v57 = vld [vmem:[%s3645_s27 + $0x2d8] sm:$0xff]  ;;  %v1647_v29 = vld [vmem:[%s3645_s27 + $0x288] sm:$0xff] }
 0x1c8   : > { %v1644_v30 = vld [vmem:[%s3645_s27 + $0x270] sm:$0xff] }
 0x1c9   : > { %1782 = vmatmul.f32.gmra.mxu3 %v4121_v40  ;;  %1759 = vmatmul.f32.gmra.mxu2 %v4126_v42  ;;  %v1913_v43 = vadd.f32 %v1909_v31, %v1457_v35  ;;  %v1390_v44 = vpop.f32.mrf.mxu0  ;;  %v1413_v48 = vpop.f32.mrf.mxu1  ;;  %v1643_v35 = vld [vmem:[%s3645_s27 + $0x268] sm:$0xff] }
 0x1ca   : > { %1834 = vmatpush.xpose.msrb.mxu2 %v1684_v34  ;;  %1857 = vmatpush.xpose.msrb.mxu3 %v1685_v11  ;;  %v1414_v50 = vadd.f32 %v1413_v48, %v1390_v44  ;;  %v1654_v34 = vld [vmem:[%s3645_s27 + $0x2c0] sm:$0xff]  ;;  %v1652_v11 = vld [vmem:[%s3645_s27 + $0x2b0] sm:$0xff]  ;;  %v1637_v44 = vld [vmem:[%s3645_s27 + $0x238] sm:$0xff] }
 0x1cb   : > { %1788 = vmatpush.xpose.msrb.mxu0 %v1682_v19  ;;  %1811 = vmatpush.xpose.msrb.mxu1 %v1683_v20  ;;  %v4138_v49 = vmul.f32 %v2049_v36, %v1913_v43  ;;  %v1651_v19 = vld [vmem:[%s3645_s27 + $0x2a8] sm:$0xff]  ;;  %v1648_v20 = vld [vmem:[%s3645_s27 + $0x290] sm:$0xff] }
 0x1cc   : > { %1713 = vmatmul.f32.gmra.mxu0 %v4131_v46  ;;  %1736 = vmatmul.f32.gmra.mxu1 %v4135_v47  ;;  %v1436_v53 = vpop.f32.mrf.mxu2  ;;  %v1459_v56 = vpop.f32.mrf.mxu3  ;;  %v1635_v48 = vld [vmem:[%s3645_s27 + $0x228] sm:$0xff] }
 0x1cd   : > { %2032 = vrot.lane.b32.xlu2 %v1913_v43, %s3268_s7  ;;  %2020 = vrot.lane.b32.xlu0 %v1913_v43, %s3269_s16  ;;  %v1437_v55 = vadd.f32 %v1436_v53, %v1414_v50  ;;  %v1636_v43 = vld [vmem:[%s3645_s27 + $0x230] sm:$0xff]  ;;  %v1631_v53 = vld [vmem:[%s3645_s27 + $0x208] sm:$0xff] }
 0x1ce   : > { %1835 = vmatpush.xpose.msrb.mxu2 %v1680_v27  ;;  %1858 = vmatpush.xpose.msrb.mxu3 %v1681_v32  ;;  %v1646_v27 = vld [vmem:[%s3645_s27 + $0x280] sm:$0xff]  ;;  %v1632_v50 = vld [vmem:[%s3645_s27 + $0x210] sm:$0xff] }
 0x1cf   : > { %1789 = vmatpush.xpose.msrb.mxu0 %v1678_v38  ;;  %1812 = vmatpush.xpose.msrb.mxu1 %v1679_v39  ;;  %v1460_v16 = vadd.f32 %v1459_v56, %v1437_v55  ;;  %v1642_v32 = vld [vmem:[%s3645_s27 + $0x260] sm:$0xff]  ;;  %v1641_v38 = vld [vmem:[%s3645_s27 + $0x258] sm:$0xff] }
 0x1d0   : > { %v1638_v39 = vld [vmem:[%s3645_s27 + $0x240] sm:$0xff] }
 0x1d1   : > { %v1915_v21 = vadd.f32 %v1909_v31, %v1460_v16  ;;  %v1645_v31 = vld [vmem:[%s3645_s27 + $0x278] sm:$0xff] }
 0x1d2   : > { %1836 = vmatpush.xpose.msrb.mxu2 %v1676_v41  ;;  %1859 = vmatpush.xpose.msrb.mxu3 %v1677_v45  ;;  %v1639_v41 = vld [vmem:[%s3645_s27 + $0x248] sm:$0xff]  ;;  %v1634_v45 = vld [vmem:[%s3645_s27 + $0x220] sm:$0xff] }
 0x1d3   : > { %1790 = vmatpush.xpose.msrb.mxu0 %v1674_v51  ;;  %1813 = vmatpush.xpose.msrb.mxu1 %v1675_v52  ;;  %v4150_v63 = vmul.f32 %v2049_v36, %v1915_v21  ;;  %v1640_v36 = vld [vmem:[%s3645_s27 + $0x250] sm:$0xff]  ;;  %v1633_v51 = vld [vmem:[%s3645_s27 + $0x218] sm:$0xff]  ;;  %v1630_v52 = vld [vmem:[%s3645_s27 + $0x200] sm:$0xff]  ;;  %s4288_s27 = scalar_lea.vmem [#allocation23], %s4255_s14 }
 0x1d5   : > { %2034 = vrot.lane.b32.xlu2 %v1915_v21, %s3268_s7  ;;  %2022 = vrot.lane.b32.xlu0 %v1915_v21, %s3269_s16 }
 0x1d6   : > { %1837 = vmatpush.xpose.msrb.mxu2 %v1672_v54  ;;  %1860 = vmatpush.xpose.msrb.mxu3 %v1673_v58 }
 0x1d7   : > { %1791 = vmatpush.xpose.msrb.mxu0 %v1670_v59  ;;  %1814 = vmatpush.xpose.msrb.mxu1 %v1671_v60  ;;  %v1910_v60 = vperm.slane %v4108_v15, 1 }
 0x1da   : > { %1838 = vmatpush.xpose.msrb.mxu2 %v1668_v61  ;;  %1861 = vmatpush.xpose.msrb.mxu3 %v1669_v62  ;;  %v2050_v61 = vperm.slane %v4112_v24, 1 }
 0x1db   : > { %1792 = vmatpush.xpose.msrb.mxu0 %v1666_v22  ;;  %1815 = vmatpush.xpose.msrb.mxu1 %v1667_v0 }
 0x1dd   : > { %1979 = vrot.lane.b32.xlu2 %v4012_v8, %s3268_s7 }
 0x1de   : > { %1839 = vmatpush.xpose.msrb.mxu2 %v1664_v25  ;;  %1862 = vmatpush.xpose.msrb.mxu3 %v1665_v2  ;;  %v1933_v2 = vlaneseq }
 0x1df   : > { %1793 = vmatpush.xpose.msrb.mxu0 %v1662_v3  ;;  %1816 = vmatpush.xpose.msrb.mxu1 %v1663_v4 }
 0x1e0   : > { %v4220_v3 = vand.u32 127, %v1933_v2 }
 0x1e2   : > { %1840 = vmatpush.xpose.msrb.mxu2 %v1660_v5  ;;  %1863 = vmatpush.xpose.msrb.mxu3 %v1661_v28  ;;  %v1935_v4 = vadd.s32 128, %v4220_v3  ;;  %v4227_v28 = vld [vmem:[%s739_s8] sm:$0x3]  ;;  %vm1970_vm0 = vcmp.lt.s32.totalorder %v4220_v3, 127  ;;  %vm1983_vm1 = vcmp.lt.s32.totalorder %v4220_v3, 1  ;;  %s4313_s8 = scalar_lea.vmem [#allocation21], %s4255_s14 }
 0x1e3   : > { %1794 = vmatpush.xpose.msrb.mxu0 %v1658_v6  ;;  %1817 = vmatpush.xpose.msrb.mxu1 %v1659_v7  ;;  %v1940_v6 = vand.u32 1, %v4220_v3  ;;  %s2124_s5 = sshll.u32 %s4313_s8, 4  ;;  %s4353_s5 = int_to_ptr.vmem [resolvable:$true] %s2124_s5 }
 0x1e4   : > { %v1947_v7 = vand.u32 1, %v1935_v4 }
 0x1e5   : > { %vm4239_vm2 = vcmp.eq.s32.totalorder %v1940_v6, 0 }
 0x1e6   : > { %1841 = vmatpush.xpose.msrb.mxu2 %v1656_v33  ;;  %1864 = vmatpush.xpose.msrb.mxu3 %v1657_v57  ;;  %v4232_v33 = vld [vmem:[%s749_s19] sm:$0x3]  ;;  %v1993_v57 = vperm.slane %v4227_v28, 0  ;;  %vm4243_vm3 = vcmp.eq.s32.totalorder %v1947_v7, 0 }
 0x1e7   : > { %1795 = vmatpush.xpose.msrb.mxu0 %v1654_v34  ;;  %1818 = vmatpush.xpose.msrb.mxu1 %v1655_v37  ;;  %v1994_v34 = vperm.slane %v4227_v28, 1 }
 0x1ea   : > { %1842 = vmatpush.xpose.msrb.mxu2 %v1652_v11  ;;  %1865 = vmatpush.xpose.msrb.mxu3 %v1653_v14 }
 0x1eb   : > { %1796 = vmatpush.xpose.msrb.mxu0 %v1650_v17  ;;  %1819 = vmatpush.xpose.msrb.mxu1 %v1651_v19  ;;  %v2002_v17 = vperm.slane %v4232_v33, 0  ;;  %v2003_v19 = vperm.slane %v4232_v33, 1 }
 0x1ee   : > { %1843 = vmatpush.xpose.msrb.mxu2 %v1648_v20  ;;  %1866 = vmatpush.xpose.msrb.mxu3 %v1649_v23  ;;  %v1976_v20 = vpop.permute.xlu0 %1975 }
 0x1ef   : > { %1797 = vmatpush.xpose.msrb.mxu0 %v1646_v27  ;;  %1820 = vmatpush.xpose.msrb.mxu1 %v1647_v29 }
 0x1f2   : > { %1844 = vmatpush.xpose.msrb.mxu2 %v1644_v30  ;;  %1867 = vmatpush.xpose.msrb.mxu3 %v1645_v31 }
 0x1f3   : > { %1798 = vmatpush.xpose.msrb.mxu0 %v1642_v32  ;;  %1821 = vmatpush.xpose.msrb.mxu1 %v1643_v35 }
 0x1f6   : > { %1845 = vmatpush.xpose.msrb.mxu2 %v1640_v36  ;;  %1868 = vmatpush.xpose.msrb.mxu3 %v1641_v38  ;;  %v1997_v36 = vmul.f32 %v1993_v57, %v3944_v1  ;;  %v1998_v38 = vmul.f32 %v1994_v34, %v4012_v8 }
 0x1f7   : > { %1799 = vmatpush.xpose.msrb.mxu0 %v1638_v39  ;;  %1822 = vmatpush.xpose.msrb.mxu1 %v1639_v41 }
 0x1fa   : > { %1846 = vmatpush.xpose.msrb.mxu2 %v1636_v43  ;;  %1869 = vmatpush.xpose.msrb.mxu3 %v1637_v44 }
 0x1fb   : > { %1800 = vmatpush.xpose.msrb.mxu0 %v1634_v45  ;;  %1823 = vmatpush.xpose.msrb.mxu1 %v1635_v48 }
 0x1fe   : > { %1847 = vmatpush.xpose.msrb.mxu2 %v1632_v50  ;;  %1870 = vmatpush.xpose.msrb.mxu3 %v1633_v51 }
 0x1ff   : > { %1801 = vmatpush.xpose.msrb.mxu0 %v1630_v52  ;;  %1824 = vmatpush.xpose.msrb.mxu1 %v1631_v53  ;;  %v1967_v37 = vpop.permute.xlu1 %1966  ;;  %v4282_v52 = vld [vmem:[%s729_s6] sm:$0x3]  ;;  %v4284_v53 = vpop.permute.xlu0 %1964  ;;  %s2101_s6 = sadd.s32 %s2578_s0, %s4062_s18  ;;  %s2144_s0 = sshll.u32 %s4288_s27, 4  ;;  %s4359_s0 = int_to_ptr.vmem [resolvable:$true] %s2144_s0 }
 0x200   : > { %s4317_s30 = sshll.u32 %s2101_s6, 3 }
 0x201   : > { %1848 = vmatmul.f32.vlgmr.msrb.gmra.mxu2 %v4092_v10  ;;  %1871 = vmatmul.f32.vlgmr.msrb.gmra.mxu3 %v4087_v9  ;;  %v1479_v54 = vpop.f32.mrf.mxu0  ;;  %v1502_v55 = vpop.f32.mrf.mxu1  ;;  %s2143_s22 = scalar_lea.hbm %s4608_s12, %s4317_s30  ;;  %s2103_s14 = scalar_lea.hbm %s4609_s17, %s4317_s30 }
 0x202   : > { %1802 = vmatmul.f32.vlgmr.msrb.gmra.mxu0 %v4101_v12  ;;  %1825 = vmatmul.f32.vlgmr.msrb.gmra.mxu1 %v4105_v13  ;;  %v1503_v56 = vadd.f32 %v1502_v55, %v1479_v54  ;;  %v1923_v55 = vperm.slane %v4282_v52, 0  ;;  %s4351_s2 = sshll.u32 %s2143_s22, 4  ;;  %s4362_s6 = sshll.u32 %s2103_s14, 4  ;;  %s2147_s2 = int_to_ptr.hbm [resolvable:$true] %s4351_s2  ;;  %s2107_s6 = int_to_ptr.hbm [resolvable:$true] %s4362_s6 }
 0x204   : > { %v1525_v58 = vpop.f32.mrf.mxu2  ;;  %v1548_v59 = vpop.f32.mrf.mxu3 }
 0x205   : > { %v1526_v16 = vadd.f32 %v1525_v58, %v1503_v56 }
 0x207   : > { %v1549_v10 = vadd.f32 %v1548_v59, %v1526_v16 }
 0x209   : > { %1851 = vmatmul.f32.gmra.mxu2 %v4126_v42  ;;  %1874 = vmatmul.f32.gmra.mxu3 %v4121_v40  ;;  %v1914_v9 = vadd.f32 %v1910_v60, %v1549_v10  ;;  %v1482_v12 = vpop.f32.mrf.mxu0  ;;  %v1505_v13 = vpop.f32.mrf.mxu1 }
 0x20a   : > { %1805 = vmatmul.f32.gmra.mxu0 %v4131_v46  ;;  %1828 = vmatmul.f32.gmra.mxu1 %v4135_v47  ;;  %v1506_v62 = vadd.f32 %v1505_v13, %v1482_v12  ;;  %v1963_v47 = vpop.permute.xlu2 %1962 }
 0x20b   : > { %v4204_v21 = vmul.f32 %v2050_v61, %v1914_v9  ;;  %2024 = vrot.lane.b32.xlu1 %v1914_v9, %s3269_s16  ;;  %2036 = vrot.lane.b32.xlu0 %v1914_v9, %s3268_s7  ;;  %v1971_v27 = vsel %vm1970_vm0, %v1963_v47, %v1967_v37  ;;  %v1973_v29 = vsel %vm1970_vm0, %v1967_v37, %v1963_v47 }
 0x20c   : > { %v1528_v15 = vpop.f32.mrf.mxu2  ;;  %v1551_v40 = vpop.f32.mrf.mxu3 }
 0x20d   : > { %v1529_v42 = vadd.f32 %v1528_v15, %v1506_v62  ;;  %v2019_v15 = vld [vmem:[%s759_s4] sm:$0x3]  ;;  %s4610_s4 = smov %s4609_s17 }
 0x20f   : > { %v1552_v22 = vadd.f32 %v1551_v40, %v1529_v42  ;;  %v2058_v42 = vperm.slane %v2019_v15, 0  ;;  %v2059_v40 = vperm.slane %v2019_v15, 1 }
 0x211   : > { %v1916_v24 = vadd.f32 %v1910_v60, %v1552_v22 }
 0x212   : > { %v4214_v0 = vpop.permute.xlu2 %1968 }
 0x213   : > { %v4208_v46 = vmul.f32 %v2050_v61, %v1916_v24  ;;  %2026 = vrot.lane.b32.xlu1 %v1916_v24, %s3269_s16  ;;  %1981 = vrot.lane.b32.xlu0 %v4025_v26, %s3268_s7  ;;  %s4606_s16 = sld [smem:[#allocation57_spill]] }
 0x219   : > { %s4607_s24 = smov %s4606_s16  ;;  %s2123_s18 = scalar_lea.hbm %s4606_s16, %s4317_s30 }
 0x21a   : > { %s4324_s3 = sshll.u32 %s2123_s18, 4  ;;  %s3062_s16 = scalar_lea.hbm %s4607_s24, 128  ;;  %s2127_s3 = int_to_ptr.hbm [resolvable:$true] %s4324_s3 }
 0x21b   : > { %2038 = vrot.lane.b32.xlu1 %v1916_v24, %s3268_s7 }
 0x223   : > { %1977 = vrot.lane.b32.xlu1 %v3958_v18, %s3268_s7 }
 0x227   : > { %v4218_v25 = vpop.permute.xlu2 %2032 }
 0x22f   : > { %v4223_v5 = vpop.permute.xlu2 %2034 }
 0x237   : > { %v1980_v23 = vpop.permute.xlu2 %1979 }
 0x238   : > { %v1984_v30 = vsel %vm1983_vm1, %v1976_v20, %v1980_v23  ;;  %v1986_v31 = vsel %vm1983_vm1, %v1980_v23, %v1976_v20 }
 0x239   : > { %v1988_v32 = vsel %vm4239_vm2, %v1971_v27, %v1986_v31  ;;  %v1989_v35 = vsel %vm4243_vm3, %v1973_v29, %v1984_v30 }
 0x23a   : > { %v2006_v39 = vmul.f32 %v2002_v17, %v1988_v32  ;;  %v2007_v41 = vmul.f32 %v2003_v19, %v1989_v35 }
 0x23c   : > { %v2010_v43 = vadd.f32 %v2006_v39, %v1997_v36  ;;  %v2011_v44 = vadd.f32 %v2007_v41, %v1998_v38  ;;  %v1924_v36 = vperm.slane %v4282_v52, 1 }
 0x23e   : > { %2014 = vst [vmem:[%s4276_s9] sm:$0xff] %v2010_v43 }
 0x23f   : > { %2015 = vst [vmem:[%s4276_s9 + $0x8] sm:$0xff] %v2011_v44  ;;  %v2021_v9 = vpop.permute.xlu0 %2020 }
 0x241   : > { %v1711_v1 = vpop.f32.mrf.mxu0  ;;  %v1734_v45 = vpop.f32.mrf.mxu1 }
 0x242   : > { %v1735_v48 = vadd.f32 %v1734_v45, %v1711_v1 }
 0x244   : > { %v1757_v50 = vpop.f32.mrf.mxu2  ;;  %v1780_v51 = vpop.f32.mrf.mxu3 }
 0x245   : > { %v1758_v8 = vadd.f32 %v1757_v50, %v1735_v48 }
 0x247   : > { %v1781_v54 = vadd.f32 %v1780_v51, %v1758_v8  ;;  %v2023_v62 = vpop.permute.xlu0 %2022 }
 0x249   : > { %v1927_v56 = vadd.f32 %v1923_v55, %v1781_v54  ;;  %v1714_v58 = vpop.f32.mrf.mxu0  ;;  %v1737_v16 = vpop.f32.mrf.mxu1 }
 0x24a   : > { %v1738_v59 = vadd.f32 %v1737_v16, %v1714_v58 }
 0x24b   : > { %2074 = vst [vmem:[%s4288_s27] sm:$0xff] %v1927_v56 }
 0x24c   : > { %v1760_v60 = vpop.f32.mrf.mxu2  ;;  %v1783_v61 = vpop.f32.mrf.mxu3 }
 0x24d   : > { %v1761_v10 = vadd.f32 %v1760_v60, %v1738_v59 }
 0x24f   : > { %v1784_v12 = vadd.f32 %v1783_v61, %v1761_v10 }
 0x251   : > { %v1929_v13 = vadd.f32 %v1923_v55, %v1784_v12  ;;  %v1972_v12 = vsel %vm1970_vm0, %v4284_v53, %v4214_v0 }
 0x253   : > { %2076 = vst [vmem:[%s4288_s27 + $0x10] sm:$0xff] %v1929_v13 }
 0x27d   : > { %v2025_v24 = vpop.permute.xlu1 %2024  ;;  %v2037_v47 = vpop.permute.xlu0 %2036 }
 0x27e   : > { %v2028_v2 = vsel %vm1970_vm0, %v2021_v9, %v2025_v24  ;;  %v2030_v4 = vsel %vm1970_vm0, %v2025_v24, %v2021_v9  ;;  %v2040_v6 = vsel %vm1983_vm1, %v4218_v25, %v2037_v47  ;;  %v2042_v7 = vsel %vm1983_vm1, %v2037_v47, %v4218_v25 }
 0x27f   : > { %v1803_v22 = vpop.f32.mrf.mxu0  ;;  %v1826_v37 = vpop.f32.mrf.mxu1  ;;  %v2044_v20 = vsel %vm4239_vm2, %v2028_v2, %v2042_v7  ;;  %v2045_v23 = vsel %vm4243_vm3, %v2030_v4, %v2040_v6 }
 0x280   : > { %v1827_v27 = vadd.f32 %v1826_v37, %v1803_v22  ;;  %v2062_v30 = vmul.f32 %v2058_v42, %v2044_v20  ;;  %v2063_v31 = vmul.f32 %v2059_v40, %v2045_v23 }
 0x282   : > { %v2066_v25 = vadd.f32 %v2062_v30, %v4138_v49  ;;  %v2067_v38 = vadd.f32 %v2063_v31, %v4204_v21 }
 0x284   : > { %v1849_v29 = vpop.f32.mrf.mxu2  ;;  %v1872_v32 = vpop.f32.mrf.mxu3  ;;  %2070 = vst [vmem:[%s4313_s8] sm:$0xff] %v2066_v25 }
 0x285   : > { %v1850_v35 = vadd.f32 %v1849_v29, %v1827_v27  ;;  %2071 = vst [vmem:[%s4313_s8 + $0x8] sm:$0xff] %v2067_v38  ;;  %v2027_v43 = vpop.permute.xlu1 %2026  ;;  %v1982_v61 = vpop.permute.xlu0 %1981 }
 0x286   : > { %v2029_v52 = vsel %vm1970_vm0, %v2023_v62, %v2027_v43  ;;  %v2031_v54 = vsel %vm1970_vm0, %v2027_v43, %v2023_v62 }
 0x287   : > { %v1873_v39 = vadd.f32 %v1872_v32, %v1850_v35  ;;  %v1806_v41 = vpop.f32.mrf.mxu0  ;;  %v1829_v1 = vpop.f32.mrf.mxu1 }
 0x288   : > { %v1830_v49 = vadd.f32 %v1829_v1, %v1806_v41 }
 0x289   : > { %v1928_v44 = vadd.f32 %v1924_v36, %v1873_v39 }
 0x28b   : > { %2075 = vst [vmem:[%s4288_s27 + $0x8] sm:$0xff] %v1928_v44 }
 0x28c   : > { %v1852_v21 = vpop.f32.mrf.mxu2  ;;  %v1875_v45 = vpop.f32.mrf.mxu3 }
 0x28d   : > { %v1853_v48 = vadd.f32 %v1852_v21, %v1830_v49  ;;  %v2039_v8 = vpop.permute.xlu1 %2038 }
 0x28e   : > { %v2041_v55 = vsel %vm1983_vm1, %v4223_v5, %v2039_v8  ;;  %v2043_v56 = vsel %vm1983_vm1, %v2039_v8, %v4223_v5 }
 0x28f   : > { %v1876_v50 = vadd.f32 %v1875_v45, %v1853_v48  ;;  %v2046_v58 = vsel %vm4239_vm2, %v2029_v52, %v2043_v56  ;;  %v2047_v16 = vsel %vm4243_vm3, %v2031_v54, %v2041_v55 }
 0x290   : > { %v2064_v59 = vmul.f32 %v2058_v42, %v2046_v58  ;;  %v2065_v60 = vmul.f32 %v2059_v40, %v2047_v16 }
 0x291   : > { %v1930_v51 = vadd.f32 %v1924_v36, %v1876_v50 }
 0x292   : > { %v2068_v5 = vadd.f32 %v2064_v59, %v4150_v63  ;;  %v2069_v10 = vadd.f32 %v2065_v60, %v4208_v46  ;;  %v1974_v63 = vsel %vm1970_vm0, %v4214_v0, %v4284_v53 }
 0x293   : > { %2077 = vst [vmem:[%s4288_s27 + $0x18] sm:$0xff] %v1930_v51  ;;  %s2084_s27 = scalar_lea.sflag [#allocation22], %s3632_s11 }
 0x294   : > { %2072 = vst [vmem:[%s4313_s8 + $0x10] sm:$0xff] %v2068_v5 }
 0x295   : > { %2073 = vst [vmem:[%s4313_s8 + $0x18] sm:$0xff] %v2069_v10  ;;  %v1978_v9 = vpop.permute.xlu1 %1977  ;;  %s3056_s8 = sshra.s32 %s2127_s3, 4  ;;  %s3057_s8 = int_to_ptr.hbm [resolvable:$true] %s3056_s8 }
 0x296   : > { %v1985_v46 = vsel %vm1983_vm1, %v1978_v9, %v1982_v61  ;;  %v1987_v13 = vsel %vm1983_vm1, %v1982_v61, %v1978_v9  ;;  %s3058_s30 = scalar_lea.hbm %s3057_s8, 32  ;;  %p3063_p1 = scmp.lt.s32.totalorder %s3057_s8, %s4607_s24 }
 0x297   : > { %p3059_p6 = scmp.ne.s32.totalorder %s3057_s8, %s3058_s30  ;;  %p3064_p7 = scmp.lt.s32.totalorder %s3062_s16, %s3058_s30 }
 0x299   : > { %p3060_p9 = pnand %p3059_p6, %p3559_p3  ;;  %p3065_p8 = por %p3064_p7, %p3063_p1 }
 0x29b   : > { %p3061_p2 = pneg %p3060_p9 }
 0x29d   : > { %p3066_p10 = pnand %p3065_p8, %p3061_p2 }
 0x29f   : > { %3069 = shalt.err (!%p3066_p10)
}
 0x2a0   : > { %s3270_s23 = smov 256   ;;  %s3271_s22 = smov 512   ;;  %v1990_v0 = vsel %vm4239_vm2, %v1972_v12, %v1987_v13  ;;  %v1991_v3 = vsel %vm4243_vm3, %v1974_v63, %v1985_v46 }
 0x2a1   : > { %s3272_s13 = smov 16   ;;  %s3084_s10 = sshra.s32 %s2147_s2, 4  ;;  %s3085_s10 = int_to_ptr.hbm [resolvable:$true] %s3084_s10 }
 0x2a2   : > { %2600 = dma.vmem_to_hbm [thread:$0]  (%p3559_p3), %s4353_s5, 512, %s2127_s3, %s2084_s27, %s3270_s23, %s3271_s22, %s3272_s13  }
 0x2a3   : > { %s3086_s17 = scalar_lea.hbm %s3085_s10, 32  ;;  %s3090_s30 = scalar_lea.hbm %s4608_s12, 128 }
 0x2a4   : > { %p3087_p11 = scmp.ne.s32.totalorder %s3085_s10, %s3086_s17  ;;  %p3091_p0 = scmp.lt.s32.totalorder %s3085_s10, %s4608_s12 }
 0x2a5   : > { %p3092_p5 = scmp.lt.s32.totalorder %s3090_s30, %s3086_s17 }
 0x2a6   : > { %p3088_p12 = pnand %p3087_p11, %p3559_p3 }
 0x2a7   : > { %p3093_p6 = por %p3092_p5, %p3091_p0 }
 0x2a8   : > { %p3089_p13 = pneg %p3088_p12 }
 0x2aa   : > { %p3094_p9 = pnand %p3093_p6, %p3089_p13 }
 0x2ac   : > { %3097 = shalt.err (!%p3094_p9)
}
 0x2ad   : > { %2601 = dma.vmem_to_hbm [thread:$0]  (%p3559_p3), %s4359_s0, 512, %s2147_s2, %s2084_s27, %s3270_s23, %s3271_s22, %s3272_s13   ;;  %v1999_v11 = vmul.f32 %v1993_v57, %v3958_v18  ;;  %v2000_v14 = vmul.f32 %v1994_v34, %v4025_v26  ;;  %v2008_v53 = vmul.f32 %v2002_v17, %v1990_v0  ;;  %v2009_v62 = vmul.f32 %v2003_v19, %v1991_v3 }
 0x2ae   : > { %s2104_s5 = sshll.u32 %s4276_s9, 4  ;;  %s2079_s11 = scalar_lea.sflag [#allocation7], %s844_s1  ;;  %s2105_s5 = int_to_ptr.vmem [resolvable:$true] %s2104_s5 }
 0x2af   : > { %v2012_v15 = vadd.f32 %v2008_v53, %v1999_v11  ;;  %v2013_v42 = vadd.f32 %v2009_v62, %v2000_v14  ;;  %s3112_s2 = sshra.s32 %s2107_s6, 4  ;;  %s3118_s16 = scalar_lea.hbm %s4610_s4, 128  ;;  %s3113_s2 = int_to_ptr.hbm [resolvable:$true] %s3112_s2 }
 0x2b0   : > { %s3114_s0 = scalar_lea.hbm %s3113_s2, 32  ;;  %p3119_p8 = scmp.lt.s32.totalorder %s3113_s2, %s4610_s4 }
 0x2b1   : > { %2016 = vst [vmem:[%s4276_s9 + $0x10] sm:$0xff] %v2012_v15  ;;  %p3115_p2 = scmp.ne.s32.totalorder %s3113_s2, %s3114_s0  ;;  %p3120_p10 = scmp.lt.s32.totalorder %s3118_s16, %s3114_s0 }
 0x2b2   : > { %2017 = vst [vmem:[%s4276_s9 + $0x18] sm:$0xff] %v2013_v42 }
 0x2b3   : > { %p3116_p1 = pnand %p3115_p2, %p3559_p3  ;;  %p3121_p11 = por %p3120_p10, %p3119_p8 }
 0x2b5   : > { %p3117_p7 = pneg %p3116_p1 }
 0x2b7   : > { %p3122_p12 = pnand %p3121_p11, %p3117_p7 }
 0x2b9   : > { %3125 = shalt.err (!%p3122_p12)
}
 0x2ba   : > { %2599 = dma.vmem_to_hbm [thread:$0]  (%p3559_p3), %s2105_s5, 512, %s2107_s6, %s2079_s11, %s3270_s23, %s3271_s22, %s3272_s13  }
 0x2bb PF: > { %s4611_s25 = sld [smem:[#allocation31_spill]]  ;;  %p2644_p13 = scmp.ge.s32.totalorder %s3264_s21, 2 }
 0x2bd   : > { %p2634_p0 = pnand %p2644_p13, %p3568_p4 }
 0x2bf   : > { %p2635_p5 = pneg %p2634_p0 }
 0x2c1   : > { %s2161_s1 = sand.u32 1, %s4611_s25  }
 0x2c2   : > { %s2162_s9 = scalar_lea.sflag [#allocation7], %s2161_s1 }
 0x2c3   : > { %3203 = dma.done.wait (%p2635_p5), %s2162_s9, 512  }
 0x2c4   : > { %3205 = vsyncadd (%p2635_p5), %s2162_s9, 4294966784  ;;  %s4612_s10 = sadd.s32 4294967294, %s3264_s21  }
 0x2c5   : > { %s2171_s17 = sand.u32 1, %s4612_s10  }
 0x2c6   : > { %s2172_s28 = scalar_lea.sflag [#allocation22], %s2171_s17 }
 0x2c7   : > { %3207 = dma.done.wait (%p2635_p5), %s2172_s28, 1024  }
 0x2c8   : > { %3209 = vsyncadd (%p2635_p5), %s2172_s28, 4294966272  ;;  %s45_s21 = sadd.s32 1, %s3264_s21   ;;  %s4614_s25 = sld [smem:[#allocation32_spill]] }
 0x2c9   : > { %p4458_p3 = scmp.ge.s32.totalorder %s45_s21, 6   ;;  %s4615_s26 = sld [smem:[#allocation33_spill]] }
 0x2ca   : > { %s4616_s27 = sld [smem:[#allocation44_spill]]  ;;  %s4625_s28 = smov %s3228_s29 }
 0x2cb   : > { %s4617_s23 = sld [smem:[#allocation34_spill]]  ;;  %s4627_s14 = smov %s3240_s15 }
 0x2cc   : > { %s4618_s30 = sld [smem:[#allocation42_spill]] }
 0x2cd   : > { %s4619_s22 = sld [smem:[#allocation35_spill]] }
 0x2ce   : > { %s4620_s16 = sld [smem:[#allocation43_spill]] }
 0x2cf   : > { %s4621_s17 = sld [smem:[#allocation38_spill]]  ;;  %44 = sbr.rel (!%p4458_p3) target bundleno = 35 (0x23), region = 251 }
 0x2d0   : > { %s4622_s18 = sld [smem:[#allocation39_spill]] }
 0x2d1   : > { %s4623_s19 = sld [smem:[#allocation40_spill]]  ;;  %s4626_s29 = smov %s4617_s23 }
 0x2d2   : > { %s4624_s20 = sld [smem:[#allocation41_spill]] }
 0x2d3   : > { %s4628_s15 = smov %s4619_s22 }
 0x2d4   :  { %2188 = vsyncpa [#allocation6], 1 }
 0x2d5   :  { %2190 = vsyncpa [#allocation6 + $0x1], 1 }
 0x2d6   :  { %2191 = vsyncpa [#allocation9], 1 }
 0x2d7   :  { %2193 = vsyncpa [#allocation9 + $0x1], 1 }
 0x2d8   :  { %2194 = vsyncpa [#allocation12], 1 }
 0x2d9   :  { %2196 = vsyncpa [#allocation12 + $0x1], 1 }
 0x2da   :  { %2197 = vsyncpa [#allocation15], 1 }
 0x2db   :  { %2199 = vsyncpa [#allocation15 + $0x1], 1 }
 0x2dc   :  { %2200 = vsyncpa [#allocation18], 1 }
 0x2dd   :  { %2202 = vsyncpa [#allocation18 + $0x1], 1 }
 0x2de   :  { %2203 = vsyncpa [#allocation7], 1 }
 0x2df   :  { %2205 = vsyncpa [#allocation7 + $0x1], 1 }
 0x2e0   :  { %2206 = vsyncpa [#allocation22], 1 }
 0x2e1   :  { %2208 = vsyncpa [#allocation22 + $0x1], 1 }

</bundles_post_ra>
